<compile_context>
chip_gen: v5e
topology: v5e:2x2
jax: 0.10.0
libtpu: 0.0.40
codegen_flags: <defaults>
</compile_context>

<pallas_src>
import functools

import jax
import jax.numpy as jnp
from jax import lax
from jax.experimental import pallas as pl
from jax.experimental.pallas import tpu as pltpu


def _row_copy(tok_hbm, tok_buf, sems, slot, i, row):
    """(1, D) row gather HBM->VMEM, signaling the slot's shared DMA semaphore.

    The SAME helper builds the start descriptors (real `row`) and the wait
    descriptors (`row=0`): DMA waits are byte-count based, so a wait only has
    to match the started copy's transfer size, which is guaranteed here
    because both descriptors come from this one place.
    """
    return pltpu.make_async_copy(
        tok_hbm.at[pl.ds(row, 1)],
        tok_buf.at[slot, pl.ds(i, 1)],
        sems.at[slot],
    )


def _embedding_kernel(ids_ref, tok_hbm, pos_ref, gamma_ref, beta_ref, out_ref,
                      tok_buf, sems, *, eps, ts, nt, vocab):
    # ids_ref   : SMEM (B, S) int32 token ids (scalar prefetch)
    # tok_hbm   : HBM  (vocab, D) token-embedding table (manual DMA gather)
    # pos_ref   : VMEM (TS, D) positional rows for this block (tiled BlockSpec)
    # gamma_ref : VMEM (1, D) LayerNorm weight, beta_ref: (1, D) bias
    # out_ref   : VMEM (TS, D) output block (batch dim squeezed by BlockSpec)
    # tok_buf   : VMEM (2, TS, D) double-buffered gathered token rows
    # sems      : DMA semaphores, shape (2,) — one per slot
    b = pl.program_id(0)
    t = pl.program_id(1)
    slot = lax.rem(t, 2)

    def start_gather(block, slot_idx):
        base = block * ts
        for i in range(ts):
            row = ids_ref[b, base + i]
            row = jnp.clip(row, 0, vocab - 1)      # guard OOB ids before DMA
            _row_copy(tok_hbm, tok_buf, sems, slot_idx, i, row).start()

    # Prime: first block of this batch row goes into slot 0.
    @pl.when(t == 0)
    def _():
        start_gather(0, 0)

    # Prefetch next block's rows into the other slot BEFORE waiting on the
    # current slot (all SMEM id reads + DMA starts stay ahead of any .wait()).
    @pl.when(t + 1 < nt)
    def _():
        start_gather(t + 1, 1 - slot)

    # Wait for the TS row copies of the current slot (byte-count waits against
    # the shared per-slot semaphore, shapes matched via _row_copy).
    for i in range(ts):
        _row_copy(tok_hbm, tok_buf, sems, slot, i, 0).wait()

    tok = tok_buf[slot].astype(jnp.float32)       # (TS, D)
    pos = pos_ref[...].astype(jnp.float32)        # (TS, D)

    e = tok + pos
    mean = jnp.mean(e, axis=-1, keepdims=True)
    centered = e - mean
    var = jnp.mean(centered * centered, axis=-1, keepdims=True)
    norm = centered * lax.rsqrt(var + eps)
    gamma = gamma_ref[...].astype(jnp.float32)
    beta = beta_ref[...].astype(jnp.float32)
    out_ref[...] = (norm * gamma + beta).astype(out_ref.dtype)


def _pick_block_tokens(seq_len, target):
    """Largest multiple-of-8 divisor of seq_len that is <= target.

    Falls back to the full sequence length (block dim == full dim is always a
    legal block shape) when no such divisor exists.
    """
    best = None
    d = 8
    while d <= min(seq_len, target):
        if seq_len % d == 0:
            best = d
        d += 8
    return best if best is not None else seq_len


def embedding_forward(x_ids, tok_table, pos_table, gamma, beta, eps=1e-5,
                      block_tokens=128):
    B, S = x_ids.shape
    vocab, D = tok_table.shape

    # Cap TS so the double-buffered working set
    #   2*TS*D (tok_buf) + 2*TS*D (pos, pipeline-buffered) + 2*TS*D (out)
    # stays well inside a conservative budget that fits every generation
    # (v7x scoped default 32 MiB of 64 MiB physical).
    bytes_per_row = D * (2 * tok_table.dtype.itemsize
                         + 2 * pos_table.dtype.itemsize
                         + 2 * 4)
    budget = 24 * 1024 * 1024
    max_rows = max(8, (budget // max(bytes_per_row, 1)) // 8 * 8)
    ts = _pick_block_tokens(S, min(block_tokens, max_rows))
    num_t = S // ts

    pos = pos_table[:S]                 # only the rows the forward pass uses
    gamma2 = jnp.asarray(gamma).reshape(1, D)
    beta2 = jnp.asarray(beta).reshape(1, D)

    kernel = functools.partial(_embedding_kernel, eps=eps, ts=ts, nt=num_t,
                               vocab=vocab)

    grid_spec = pltpu.PrefetchScalarGridSpec(
        num_scalar_prefetch=1,
        grid=(B, num_t),
        in_specs=[
            # token table: stays in HBM, rows gathered by manual DMA
            pl.BlockSpec(memory_space=pl.ANY),
            # positional rows: tiled (TS, D) per token block (no full-S buffer)
            pl.BlockSpec((ts, D), lambda b, t, ids: (t, 0)),
            # LayerNorm affine params: resident in VMEM
            pl.BlockSpec((1, D), lambda b, t, ids: (0, 0)),
            pl.BlockSpec((1, D), lambda b, t, ids: (0, 0)),
        ],
        out_specs=pl.BlockSpec((None, ts, D), lambda b, t, ids: (b, t, 0)),
        scratch_shapes=[
            pltpu.VMEM((2, ts, D), tok_table.dtype),   # double-buffered gather
            pltpu.SemaphoreType.DMA((2,)),             # one sem per slot
        ],
    )

    work_bytes = (2 * ts * D * (tok_table.dtype.itemsize
                                + pos_table.dtype.itemsize + 4)
                  + 4 * D * 4)
    vmem_limit = int(min(64 * 1024 * 1024,
                         max(32 * 1024 * 1024, 2 * work_bytes)))

    return pl.pallas_call(
        kernel,
        out_shape=jax.ShapeDtypeStruct((B, S, D), jnp.float32),
        grid_spec=grid_spec,
        compiler_params=pltpu.CompilerParams(
            # batch axis independent -> megacore split on v7x; token axis is
            # "arbitrary" because the double-buffer state is carried across it
            dimension_semantics=("parallel", "arbitrary"),
            vmem_limit_bytes=vmem_limit,
        ),
    )(x_ids.astype(jnp.int32), tok_table, pos, gamma2, beta2)


def embedding_reference(x_ids, tok_table, pos_table, gamma, beta, eps=1e-5):
    _, S = x_ids.shape
    tok = jnp.take(tok_table, x_ids, axis=0)                 # (B, S, D)
    pos = jnp.take(pos_table, jnp.arange(S), axis=0)[None]   # (1, S, D)
    e = (tok + pos).astype(jnp.float32)
    mean = jnp.mean(e, axis=-1, keepdims=True)
    var = jnp.mean((e - mean) ** 2, axis=-1, keepdims=True)
    return (e - mean) * jax.lax.rsqrt(var + eps) * gamma + beta


if __name__ == "__main__":
    # Small deterministic shapes consistent with the module.  d_model=128 keeps
    # the output block lane-dense (full-width vector stores).
    vocab_size, max_len, d_model = 64, 32, 128
    B, S = 2, 32

    key = jax.random.PRNGKey(0)
    k_tok, k_pos, k_g, k_b, k_x = jax.random.split(key, 5)

    tok_table = jax.random.normal(k_tok, (vocab_size, d_model), dtype=jnp.float32)
    pos_table = jax.random.normal(k_pos, (max_len, d_model), dtype=jnp.float32)
    gamma = 1.0 + 0.1 * jax.random.normal(k_g, (d_model,), dtype=jnp.float32)
    beta = 0.1 * jax.random.normal(k_b, (d_model,), dtype=jnp.float32)

    x = jax.random.randint(k_x, (B, S), 0, vocab_size, dtype=jnp.int32)

    ref = embedding_reference(x, tok_table, pos_table, gamma, beta)

    # Multi-block run: TS=8 -> 4 token blocks per batch row, exercising the
    # prime + cross-step double-buffered gather path.
    out = embedding_forward(x, tok_table, pos_table, gamma, beta, block_tokens=8)
    out = jax.block_until_ready(out)
    assert out.shape == (B, S, d_model)
    assert jnp.allclose(out, ref, atol=1e-5, rtol=1e-5), "mismatch (multi-block)"

    # Single-block-per-row run (TS=S): prime-only path.
    out2 = embedding_forward(x, tok_table, pos_table, gamma, beta,
                             block_tokens=128)
    out2 = jax.block_until_ready(out2)
    assert jnp.allclose(out2, ref, atol=1e-5, rtol=1e-5), "mismatch (single-block)"

    print("KERNEL_OK")
</pallas_src>

<mosaic_0001>
module attributes {stable_mosaic.version = 11 : i64} {
  func.func @_embedding_kernel(%arg0: i32, %arg1: i32, %arg2: memref<2x32xi32, #tpu.memory_space<smem>>, %arg3: memref<64x128xf32, #tpu.memory_space<any>>, %arg4: memref<8x128xf32, #tpu.memory_space<vmem>>, %arg5: memref<1x128xf32, #tpu.memory_space<vmem>>, %arg6: memref<1x128xf32, #tpu.memory_space<vmem>>, %arg7: memref<1x8x128xf32, #tpu.memory_space<vmem>>, %arg8: memref<2x8x128xf32, #tpu.memory_space<vmem>>, %arg9: memref<2x!tpu.dma_semaphore, #tpu.memory_space<semaphore_mem>>) attributes {dimension_semantics = [#tpu.dimension_semantics<parallel>, #tpu.dimension_semantics<arbitrary>], iteration_bounds = array<i64: 2, 4>, scalar_prefetch = 1 : i64, scratch_operands = 2 : i64, tpu.core_type = #tpu.core_type<tc>, window_params = [{}, {transform_indices = @transform_1, window_bounds = array<i64: 8, 128>}, {pipeline_mode = #tpu.pipeline_mode<synchronous>, transform_indices = @transform_2, window_bounds = array<i64: 1, 128>}, {pipeline_mode = #tpu.pipeline_mode<synchronous>, transform_indices = @transform_3, window_bounds = array<i64: 1, 128>}, {transform_indices = @transform_4, window_bounds = array<i64: 1, 8, 128>}]} {
    %c2_i32 = arith.constant 2 : i32
    %0 = arith.remsi %arg1, %c2_i32 : i32
    %c0_i32 = arith.constant 0 : i32
    %1 = arith.cmpi eq, %arg1, %c0_i32 : i32
    %2 = arith.extui %1 : i1 to i32
    %c0_i32_0 = arith.constant 0 : i32
    %3 = arith.cmpi ne, %2, %c0_i32_0 : i32
    scf.if %3 {
      %78 = arith.index_cast %arg0 : i32 to index
      %c0_44 = arith.constant 0 : index
      %79 = memref.load %arg2[%78, %c0_44] : memref<2x32xi32, #tpu.memory_space<smem>>
      %c0_i32_45 = arith.constant 0 : i32
      %c63_i32 = arith.constant 63 : i32
      %80 = arith.maxsi %c0_i32_45, %79 : i32
      %81 = arith.minsi %c63_i32, %80 : i32
      %c0_i32_46 = arith.constant 0 : i32
      %c0_i32_47 = arith.constant 0 : i32
      %c0_i32_48 = arith.constant 0 : i32
      %82 = tpu.memref_slice %arg3[%81, %c0_i32_48] : memref<64x128xf32, #tpu.memory_space<any>> -> memref<1x128xf32, #tpu.memory_space<any>>
      %c0_i32_49 = arith.constant 0 : i32
      %c0_i32_50 = arith.constant 0 : i32
      %83 = tpu.memref_slice %arg8[%c0_i32_46, %c0_i32_49, %c0_i32_50] : memref<2x8x128xf32, #tpu.memory_space<vmem>> -> memref<1x1x128xf32, #tpu.memory_space<vmem>>
      %84 = tpu.memref_squeeze %83 : memref<1x1x128xf32, #tpu.memory_space<vmem>> -> memref<1x128xf32, #tpu.memory_space<vmem>>
      %85 = tpu.memref_slice %arg9[%c0_i32_47] : memref<2x!tpu.dma_semaphore, #tpu.memory_space<semaphore_mem>> -> memref<1x!tpu.dma_semaphore, #tpu.memory_space<semaphore_mem>>
      %86 = tpu.memref_squeeze %85 : memref<1x!tpu.dma_semaphore, #tpu.memory_space<semaphore_mem>> -> memref<!tpu.dma_semaphore, #tpu.memory_space<semaphore_mem>>
      tpu.enqueue_dma source(%82 : memref<1x128xf32, #tpu.memory_space<any>>) target(%84 : memref<1x128xf32, #tpu.memory_space<vmem>>) target_semaphore(%86 : memref<!tpu.dma_semaphore, #tpu.memory_space<semaphore_mem>>)
      %87 = arith.index_cast %arg0 : i32 to index
      %c1 = arith.constant 1 : index
      %88 = memref.load %arg2[%87, %c1] : memref<2x32xi32, #tpu.memory_space<smem>>
      %c0_i32_51 = arith.constant 0 : i32
      %c63_i32_52 = arith.constant 63 : i32
      %89 = arith.maxsi %c0_i32_51, %88 : i32
      %90 = arith.minsi %c63_i32_52, %89 : i32
      %c0_i32_53 = arith.constant 0 : i32
      %c0_i32_54 = arith.constant 0 : i32
      %c0_i32_55 = arith.constant 0 : i32
      %91 = tpu.memref_slice %arg3[%90, %c0_i32_55] : memref<64x128xf32, #tpu.memory_space<any>> -> memref<1x128xf32, #tpu.memory_space<any>>
      %c1_i32_56 = arith.constant 1 : i32
      %c0_i32_57 = arith.constant 0 : i32
      %92 = tpu.memref_slice %arg8[%c0_i32_53, %c1_i32_56, %c0_i32_57] : memref<2x8x128xf32, #tpu.memory_space<vmem>> -> memref<1x1x128xf32, #tpu.memory_space<vmem>>
      %93 = tpu.memref_squeeze %92 : memref<1x1x128xf32, #tpu.memory_space<vmem>> -> memref<1x128xf32, #tpu.memory_space<vmem>>
      %94 = tpu.memref_slice %arg9[%c0_i32_54] : memref<2x!tpu.dma_semaphore, #tpu.memory_space<semaphore_mem>> -> memref<1x!tpu.dma_semaphore, #tpu.memory_space<semaphore_mem>>
      %95 = tpu.memref_squeeze %94 : memref<1x!tpu.dma_semaphore, #tpu.memory_space<semaphore_mem>> -> memref<!tpu.dma_semaphore, #tpu.memory_space<semaphore_mem>>
      tpu.enqueue_dma source(%91 : memref<1x128xf32, #tpu.memory_space<any>>) target(%93 : memref<1x128xf32, #tpu.memory_space<vmem>>) target_semaphore(%95 : memref<!tpu.dma_semaphore, #tpu.memory_space<semaphore_mem>>)
      %96 = arith.index_cast %arg0 : i32 to index
      %c2 = arith.constant 2 : index
      %97 = memref.load %arg2[%96, %c2] : memref<2x32xi32, #tpu.memory_space<smem>>
      %c0_i32_58 = arith.constant 0 : i32
      %c63_i32_59 = arith.constant 63 : i32
      %98 = arith.maxsi %c0_i32_58, %97 : i32
      %99 = arith.minsi %c63_i32_59, %98 : i32
      %c0_i32_60 = arith.constant 0 : i32
      %c0_i32_61 = arith.constant 0 : i32
      %c0_i32_62 = arith.constant 0 : i32
      %100 = tpu.memref_slice %arg3[%99, %c0_i32_62] : memref<64x128xf32, #tpu.memory_space<any>> -> memref<1x128xf32, #tpu.memory_space<any>>
      %c2_i32_63 = arith.constant 2 : i32
      %c0_i32_64 = arith.constant 0 : i32
      %101 = tpu.memref_slice %arg8[%c0_i32_60, %c2_i32_63, %c0_i32_64] : memref<2x8x128xf32, #tpu.memory_space<vmem>> -> memref<1x1x128xf32, #tpu.memory_space<vmem>>
      %102 = tpu.memref_squeeze %101 : memref<1x1x128xf32, #tpu.memory_space<vmem>> -> memref<1x128xf32, #tpu.memory_space<vmem>>
      %103 = tpu.memref_slice %arg9[%c0_i32_61] : memref<2x!tpu.dma_semaphore, #tpu.memory_space<semaphore_mem>> -> memref<1x!tpu.dma_semaphore, #tpu.memory_space<semaphore_mem>>
      %104 = tpu.memref_squeeze %103 : memref<1x!tpu.dma_semaphore, #tpu.memory_space<semaphore_mem>> -> memref<!tpu.dma_semaphore, #tpu.memory_space<semaphore_mem>>
      tpu.enqueue_dma source(%100 : memref<1x128xf32, #tpu.memory_space<any>>) target(%102 : memref<1x128xf32, #tpu.memory_space<vmem>>) target_semaphore(%104 : memref<!tpu.dma_semaphore, #tpu.memory_space<semaphore_mem>>)
      %105 = arith.index_cast %arg0 : i32 to index
      %c3 = arith.constant 3 : index
      %106 = memref.load %arg2[%105, %c3] : memref<2x32xi32, #tpu.memory_space<smem>>
      %c0_i32_65 = arith.constant 0 : i32
      %c63_i32_66 = arith.constant 63 : i32
      %107 = arith.maxsi %c0_i32_65, %106 : i32
      %108 = arith.minsi %c63_i32_66, %107 : i32
      %c0_i32_67 = arith.constant 0 : i32
      %c0_i32_68 = arith.constant 0 : i32
      %c0_i32_69 = arith.constant 0 : i32
      %109 = tpu.memref_slice %arg3[%108, %c0_i32_69] : memref<64x128xf32, #tpu.memory_space<any>> -> memref<1x128xf32, #tpu.memory_space<any>>
      %c3_i32_70 = arith.constant 3 : i32
      %c0_i32_71 = arith.constant 0 : i32
      %110 = tpu.memref_slice %arg8[%c0_i32_67, %c3_i32_70, %c0_i32_71] : memref<2x8x128xf32, #tpu.memory_space<vmem>> -> memref<1x1x128xf32, #tpu.memory_space<vmem>>
      %111 = tpu.memref_squeeze %110 : memref<1x1x128xf32, #tpu.memory_space<vmem>> -> memref<1x128xf32, #tpu.memory_space<vmem>>
      %112 = tpu.memref_slice %arg9[%c0_i32_68] : memref<2x!tpu.dma_semaphore, #tpu.memory_space<semaphore_mem>> -> memref<1x!tpu.dma_semaphore, #tpu.memory_space<semaphore_mem>>
      %113 = tpu.memref_squeeze %112 : memref<1x!tpu.dma_semaphore, #tpu.memory_space<semaphore_mem>> -> memref<!tpu.dma_semaphore, #tpu.memory_space<semaphore_mem>>
      tpu.enqueue_dma source(%109 : memref<1x128xf32, #tpu.memory_space<any>>) target(%111 : memref<1x128xf32, #tpu.memory_space<vmem>>) target_semaphore(%113 : memref<!tpu.dma_semaphore, #tpu.memory_space<semaphore_mem>>)
      %114 = arith.index_cast %arg0 : i32 to index
      %c4 = arith.constant 4 : index
      %115 = memref.load %arg2[%114, %c4] : memref<2x32xi32, #tpu.memory_space<smem>>
      %c0_i32_72 = arith.constant 0 : i32
      %c63_i32_73 = arith.constant 63 : i32
      %116 = arith.maxsi %c0_i32_72, %115 : i32
      %117 = arith.minsi %c63_i32_73, %116 : i32
      %c0_i32_74 = arith.constant 0 : i32
      %c0_i32_75 = arith.constant 0 : i32
      %c0_i32_76 = arith.constant 0 : i32
      %118 = tpu.memref_slice %arg3[%117, %c0_i32_76] : memref<64x128xf32, #tpu.memory_space<any>> -> memref<1x128xf32, #tpu.memory_space<any>>
      %c4_i32_77 = arith.constant 4 : i32
      %c0_i32_78 = arith.constant 0 : i32
      %119 = tpu.memref_slice %arg8[%c0_i32_74, %c4_i32_77, %c0_i32_78] : memref<2x8x128xf32, #tpu.memory_space<vmem>> -> memref<1x1x128xf32, #tpu.memory_space<vmem>>
      %120 = tpu.memref_squeeze %119 : memref<1x1x128xf32, #tpu.memory_space<vmem>> -> memref<1x128xf32, #tpu.memory_space<vmem>>
      %121 = tpu.memref_slice %arg9[%c0_i32_75] : memref<2x!tpu.dma_semaphore, #tpu.memory_space<semaphore_mem>> -> memref<1x!tpu.dma_semaphore, #tpu.memory_space<semaphore_mem>>
      %122 = tpu.memref_squeeze %121 : memref<1x!tpu.dma_semaphore, #tpu.memory_space<semaphore_mem>> -> memref<!tpu.dma_semaphore, #tpu.memory_space<semaphore_mem>>
      tpu.enqueue_dma source(%118 : memref<1x128xf32, #tpu.memory_space<any>>) target(%120 : memref<1x128xf32, #tpu.memory_space<vmem>>) target_semaphore(%122 : memref<!tpu.dma_semaphore, #tpu.memory_space<semaphore_mem>>)
      %123 = arith.index_cast %arg0 : i32 to index
      %c5 = arith.constant 5 : index
      %124 = memref.load %arg2[%123, %c5] : memref<2x32xi32, #tpu.memory_space<smem>>
      %c0_i32_79 = arith.constant 0 : i32
      %c63_i32_80 = arith.constant 63 : i32
      %125 = arith.maxsi %c0_i32_79, %124 : i32
      %126 = arith.minsi %c63_i32_80, %125 : i32
      %c0_i32_81 = arith.constant 0 : i32
      %c0_i32_82 = arith.constant 0 : i32
      %c0_i32_83 = arith.constant 0 : i32
      %127 = tpu.memref_slice %arg3[%126, %c0_i32_83] : memref<64x128xf32, #tpu.memory_space<any>> -> memref<1x128xf32, #tpu.memory_space<any>>
      %c5_i32_84 = arith.constant 5 : i32
      %c0_i32_85 = arith.constant 0 : i32
      %128 = tpu.memref_slice %arg8[%c0_i32_81, %c5_i32_84, %c0_i32_85] : memref<2x8x128xf32, #tpu.memory_space<vmem>> -> memref<1x1x128xf32, #tpu.memory_space<vmem>>
      %129 = tpu.memref_squeeze %128 : memref<1x1x128xf32, #tpu.memory_space<vmem>> -> memref<1x128xf32, #tpu.memory_space<vmem>>
      %130 = tpu.memref_slice %arg9[%c0_i32_82] : memref<2x!tpu.dma_semaphore, #tpu.memory_space<semaphore_mem>> -> memref<1x!tpu.dma_semaphore, #tpu.memory_space<semaphore_mem>>
      %131 = tpu.memref_squeeze %130 : memref<1x!tpu.dma_semaphore, #tpu.memory_space<semaphore_mem>> -> memref<!tpu.dma_semaphore, #tpu.memory_space<semaphore_mem>>
      tpu.enqueue_dma source(%127 : memref<1x128xf32, #tpu.memory_space<any>>) target(%129 : memref<1x128xf32, #tpu.memory_space<vmem>>) target_semaphore(%131 : memref<!tpu.dma_semaphore, #tpu.memory_space<semaphore_mem>>)
      %132 = arith.index_cast %arg0 : i32 to index
      %c6 = arith.constant 6 : index
      %133 = memref.load %arg2[%132, %c6] : memref<2x32xi32, #tpu.memory_space<smem>>
      %c0_i32_86 = arith.constant 0 : i32
      %c63_i32_87 = arith.constant 63 : i32
      %134 = arith.maxsi %c0_i32_86, %133 : i32
      %135 = arith.minsi %c63_i32_87, %134 : i32
      %c0_i32_88 = arith.constant 0 : i32
      %c0_i32_89 = arith.constant 0 : i32
      %c0_i32_90 = arith.constant 0 : i32
      %136 = tpu.memref_slice %arg3[%135, %c0_i32_90] : memref<64x128xf32, #tpu.memory_space<any>> -> memref<1x128xf32, #tpu.memory_space<any>>
      %c6_i32_91 = arith.constant 6 : i32
      %c0_i32_92 = arith.constant 0 : i32
      %137 = tpu.memref_slice %arg8[%c0_i32_88, %c6_i32_91, %c0_i32_92] : memref<2x8x128xf32, #tpu.memory_space<vmem>> -> memref<1x1x128xf32, #tpu.memory_space<vmem>>
      %138 = tpu.memref_squeeze %137 : memref<1x1x128xf32, #tpu.memory_space<vmem>> -> memref<1x128xf32, #tpu.memory_space<vmem>>
      %139 = tpu.memref_slice %arg9[%c0_i32_89] : memref<2x!tpu.dma_semaphore, #tpu.memory_space<semaphore_mem>> -> memref<1x!tpu.dma_semaphore, #tpu.memory_space<semaphore_mem>>
      %140 = tpu.memref_squeeze %139 : memref<1x!tpu.dma_semaphore, #tpu.memory_space<semaphore_mem>> -> memref<!tpu.dma_semaphore, #tpu.memory_space<semaphore_mem>>
      tpu.enqueue_dma source(%136 : memref<1x128xf32, #tpu.memory_space<any>>) target(%138 : memref<1x128xf32, #tpu.memory_space<vmem>>) target_semaphore(%140 : memref<!tpu.dma_semaphore, #tpu.memory_space<semaphore_mem>>)
      %141 = arith.index_cast %arg0 : i32 to index
      %c7 = arith.constant 7 : index
      %142 = memref.load %arg2[%141, %c7] : memref<2x32xi32, #tpu.memory_space<smem>>
      %c0_i32_93 = arith.constant 0 : i32
      %c63_i32_94 = arith.constant 63 : i32
      %143 = arith.maxsi %c0_i32_93, %142 : i32
      %144 = arith.minsi %c63_i32_94, %143 : i32
      %c0_i32_95 = arith.constant 0 : i32
      %c0_i32_96 = arith.constant 0 : i32
      %c0_i32_97 = arith.constant 0 : i32
      %145 = tpu.memref_slice %arg3[%144, %c0_i32_97] : memref<64x128xf32, #tpu.memory_space<any>> -> memref<1x128xf32, #tpu.memory_space<any>>
      %c7_i32_98 = arith.constant 7 : i32
      %c0_i32_99 = arith.constant 0 : i32
      %146 = tpu.memref_slice %arg8[%c0_i32_95, %c7_i32_98, %c0_i32_99] : memref<2x8x128xf32, #tpu.memory_space<vmem>> -> memref<1x1x128xf32, #tpu.memory_space<vmem>>
      %147 = tpu.memref_squeeze %146 : memref<1x1x128xf32, #tpu.memory_space<vmem>> -> memref<1x128xf32, #tpu.memory_space<vmem>>
      %148 = tpu.memref_slice %arg9[%c0_i32_96] : memref<2x!tpu.dma_semaphore, #tpu.memory_space<semaphore_mem>> -> memref<1x!tpu.dma_semaphore, #tpu.memory_space<semaphore_mem>>
      %149 = tpu.memref_squeeze %148 : memref<1x!tpu.dma_semaphore, #tpu.memory_space<semaphore_mem>> -> memref<!tpu.dma_semaphore, #tpu.memory_space<semaphore_mem>>
      tpu.enqueue_dma source(%145 : memref<1x128xf32, #tpu.memory_space<any>>) target(%147 : memref<1x128xf32, #tpu.memory_space<vmem>>) target_semaphore(%149 : memref<!tpu.dma_semaphore, #tpu.memory_space<semaphore_mem>>)
    } else {
    }
    %c1_i32 = arith.constant 1 : i32
    %4 = arith.addi %arg1, %c1_i32 : i32
    %c4_i32 = arith.constant 4 : i32
    %5 = arith.cmpi slt, %4, %c4_i32 : i32
    %6 = arith.extui %5 : i1 to i32
    %c0_i32_1 = arith.constant 0 : i32
    %7 = arith.cmpi ne, %6, %c0_i32_1 : i32
    scf.if %7 {
      %c1_i32_44 = arith.constant 1 : i32
      %78 = arith.addi %arg1, %c1_i32_44 : i32
      %c1_i32_45 = arith.constant 1 : i32
      %79 = arith.subi %c1_i32_45, %0 : i32
      %c8_i32 = arith.constant 8 : i32
      %80 = arith.muli %78, %c8_i32 : i32
      %c0_i32_46 = arith.constant 0 : i32
      %81 = arith.addi %80, %c0_i32_46 : i32
      %82 = arith.index_cast %arg0 : i32 to index
      %83 = arith.index_cast %81 : i32 to index
      %84 = memref.load %arg2[%82, %83] : memref<2x32xi32, #tpu.memory_space<smem>>
      %c0_i32_47 = arith.constant 0 : i32
      %c63_i32 = arith.constant 63 : i32
      %85 = arith.maxsi %c0_i32_47, %84 : i32
      %86 = arith.minsi %c63_i32, %85 : i32
      %c0_i32_48 = arith.constant 0 : i32
      %87 = tpu.memref_slice %arg3[%86, %c0_i32_48] : memref<64x128xf32, #tpu.memory_space<any>> -> memref<1x128xf32, #tpu.memory_space<any>>
      %c0_i32_49 = arith.constant 0 : i32
      %c0_i32_50 = arith.constant 0 : i32
      %88 = tpu.memref_slice %arg8[%79, %c0_i32_49, %c0_i32_50] : memref<2x8x128xf32, #tpu.memory_space<vmem>> -> memref<1x1x128xf32, #tpu.memory_space<vmem>>
      %89 = tpu.memref_squeeze %88 : memref<1x1x128xf32, #tpu.memory_space<vmem>> -> memref<1x128xf32, #tpu.memory_space<vmem>>
      %90 = tpu.memref_slice %arg9[%79] : memref<2x!tpu.dma_semaphore, #tpu.memory_space<semaphore_mem>> -> memref<1x!tpu.dma_semaphore, #tpu.memory_space<semaphore_mem>>
      %91 = tpu.memref_squeeze %90 : memref<1x!tpu.dma_semaphore, #tpu.memory_space<semaphore_mem>> -> memref<!tpu.dma_semaphore, #tpu.memory_space<semaphore_mem>>
      tpu.enqueue_dma source(%87 : memref<1x128xf32, #tpu.memory_space<any>>) target(%89 : memref<1x128xf32, #tpu.memory_space<vmem>>) target_semaphore(%91 : memref<!tpu.dma_semaphore, #tpu.memory_space<semaphore_mem>>)
      %c1_i32_51 = arith.constant 1 : i32
      %92 = arith.addi %80, %c1_i32_51 : i32
      %93 = arith.index_cast %arg0 : i32 to index
      %94 = arith.index_cast %92 : i32 to index
      %95 = memref.load %arg2[%93, %94] : memref<2x32xi32, #tpu.memory_space<smem>>
      %c0_i32_52 = arith.constant 0 : i32
      %c63_i32_53 = arith.constant 63 : i32
      %96 = arith.maxsi %c0_i32_52, %95 : i32
      %97 = arith.minsi %c63_i32_53, %96 : i32
      %c0_i32_54 = arith.constant 0 : i32
      %98 = tpu.memref_slice %arg3[%97, %c0_i32_54] : memref<64x128xf32, #tpu.memory_space<any>> -> memref<1x128xf32, #tpu.memory_space<any>>
      %c1_i32_55 = arith.constant 1 : i32
      %c0_i32_56 = arith.constant 0 : i32
      %99 = tpu.memref_slice %arg8[%79, %c1_i32_55, %c0_i32_56] : memref<2x8x128xf32, #tpu.memory_space<vmem>> -> memref<1x1x128xf32, #tpu.memory_space<vmem>>
      %100 = tpu.memref_squeeze %99 : memref<1x1x128xf32, #tpu.memory_space<vmem>> -> memref<1x128xf32, #tpu.memory_space<vmem>>
      %101 = tpu.memref_slice %arg9[%79] : memref<2x!tpu.dma_semaphore, #tpu.memory_space<semaphore_mem>> -> memref<1x!tpu.dma_semaphore, #tpu.memory_space<semaphore_mem>>
      %102 = tpu.memref_squeeze %101 : memref<1x!tpu.dma_semaphore, #tpu.memory_space<semaphore_mem>> -> memref<!tpu.dma_semaphore, #tpu.memory_space<semaphore_mem>>
      tpu.enqueue_dma source(%98 : memref<1x128xf32, #tpu.memory_space<any>>) target(%100 : memref<1x128xf32, #tpu.memory_space<vmem>>) target_semaphore(%102 : memref<!tpu.dma_semaphore, #tpu.memory_space<semaphore_mem>>)
      %c2_i32_57 = arith.constant 2 : i32
      %103 = arith.addi %80, %c2_i32_57 : i32
      %104 = arith.index_cast %arg0 : i32 to index
      %105 = arith.index_cast %103 : i32 to index
      %106 = memref.load %arg2[%104, %105] : memref<2x32xi32, #tpu.memory_space<smem>>
      %c0_i32_58 = arith.constant 0 : i32
      %c63_i32_59 = arith.constant 63 : i32
      %107 = arith.maxsi %c0_i32_58, %106 : i32
      %108 = arith.minsi %c63_i32_59, %107 : i32
      %c0_i32_60 = arith.constant 0 : i32
      %109 = tpu.memref_slice %arg3[%108, %c0_i32_60] : memref<64x128xf32, #tpu.memory_space<any>> -> memref<1x128xf32, #tpu.memory_space<any>>
      %c2_i32_61 = arith.constant 2 : i32
      %c0_i32_62 = arith.constant 0 : i32
      %110 = tpu.memref_slice %arg8[%79, %c2_i32_61, %c0_i32_62] : memref<2x8x128xf32, #tpu.memory_space<vmem>> -> memref<1x1x128xf32, #tpu.memory_space<vmem>>
      %111 = tpu.memref_squeeze %110 : memref<1x1x128xf32, #tpu.memory_space<vmem>> -> memref<1x128xf32, #tpu.memory_space<vmem>>
      %112 = tpu.memref_slice %arg9[%79] : memref<2x!tpu.dma_semaphore, #tpu.memory_space<semaphore_mem>> -> memref<1x!tpu.dma_semaphore, #tpu.memory_space<semaphore_mem>>
      %113 = tpu.memref_squeeze %112 : memref<1x!tpu.dma_semaphore, #tpu.memory_space<semaphore_mem>> -> memref<!tpu.dma_semaphore, #tpu.memory_space<semaphore_mem>>
      tpu.enqueue_dma source(%109 : memref<1x128xf32, #tpu.memory_space<any>>) target(%111 : memref<1x128xf32, #tpu.memory_space<vmem>>) target_semaphore(%113 : memref<!tpu.dma_semaphore, #tpu.memory_space<semaphore_mem>>)
      %c3_i32_63 = arith.constant 3 : i32
      %114 = arith.addi %80, %c3_i32_63 : i32
      %115 = arith.index_cast %arg0 : i32 to index
      %116 = arith.index_cast %114 : i32 to index
      %117 = memref.load %arg2[%115, %116] : memref<2x32xi32, #tpu.memory_space<smem>>
      %c0_i32_64 = arith.constant 0 : i32
      %c63_i32_65 = arith.constant 63 : i32
      %118 = arith.maxsi %c0_i32_64, %117 : i32
      %119 = arith.minsi %c63_i32_65, %118 : i32
      %c0_i32_66 = arith.constant 0 : i32
      %120 = tpu.memref_slice %arg3[%119, %c0_i32_66] : memref<64x128xf32, #tpu.memory_space<any>> -> memref<1x128xf32, #tpu.memory_space<any>>
      %c3_i32_67 = arith.constant 3 : i32
      %c0_i32_68 = arith.constant 0 : i32
      %121 = tpu.memref_slice %arg8[%79, %c3_i32_67, %c0_i32_68] : memref<2x8x128xf32, #tpu.memory_space<vmem>> -> memref<1x1x128xf32, #tpu.memory_space<vmem>>
      %122 = tpu.memref_squeeze %121 : memref<1x1x128xf32, #tpu.memory_space<vmem>> -> memref<1x128xf32, #tpu.memory_space<vmem>>
      %123 = tpu.memref_slice %arg9[%79] : memref<2x!tpu.dma_semaphore, #tpu.memory_space<semaphore_mem>> -> memref<1x!tpu.dma_semaphore, #tpu.memory_space<semaphore_mem>>
      %124 = tpu.memref_squeeze %123 : memref<1x!tpu.dma_semaphore, #tpu.memory_space<semaphore_mem>> -> memref<!tpu.dma_semaphore, #tpu.memory_space<semaphore_mem>>
      tpu.enqueue_dma source(%120 : memref<1x128xf32, #tpu.memory_space<any>>) target(%122 : memref<1x128xf32, #tpu.memory_space<vmem>>) target_semaphore(%124 : memref<!tpu.dma_semaphore, #tpu.memory_space<semaphore_mem>>)
      %c4_i32_69 = arith.constant 4 : i32
      %125 = arith.addi %80, %c4_i32_69 : i32
      %126 = arith.index_cast %arg0 : i32 to index
      %127 = arith.index_cast %125 : i32 to index
      %128 = memref.load %arg2[%126, %127] : memref<2x32xi32, #tpu.memory_space<smem>>
      %c0_i32_70 = arith.constant 0 : i32
      %c63_i32_71 = arith.constant 63 : i32
      %129 = arith.maxsi %c0_i32_70, %128 : i32
      %130 = arith.minsi %c63_i32_71, %129 : i32
      %c0_i32_72 = arith.constant 0 : i32
      %131 = tpu.memref_slice %arg3[%130, %c0_i32_72] : memref<64x128xf32, #tpu.memory_space<any>> -> memref<1x128xf32, #tpu.memory_space<any>>
      %c4_i32_73 = arith.constant 4 : i32
      %c0_i32_74 = arith.constant 0 : i32
      %132 = tpu.memref_slice %arg8[%79, %c4_i32_73, %c0_i32_74] : memref<2x8x128xf32, #tpu.memory_space<vmem>> -> memref<1x1x128xf32, #tpu.memory_space<vmem>>
      %133 = tpu.memref_squeeze %132 : memref<1x1x128xf32, #tpu.memory_space<vmem>> -> memref<1x128xf32, #tpu.memory_space<vmem>>
      %134 = tpu.memref_slice %arg9[%79] : memref<2x!tpu.dma_semaphore, #tpu.memory_space<semaphore_mem>> -> memref<1x!tpu.dma_semaphore, #tpu.memory_space<semaphore_mem>>
      %135 = tpu.memref_squeeze %134 : memref<1x!tpu.dma_semaphore, #tpu.memory_space<semaphore_mem>> -> memref<!tpu.dma_semaphore, #tpu.memory_space<semaphore_mem>>
      tpu.enqueue_dma source(%131 : memref<1x128xf32, #tpu.memory_space<any>>) target(%133 : memref<1x128xf32, #tpu.memory_space<vmem>>) target_semaphore(%135 : memref<!tpu.dma_semaphore, #tpu.memory_space<semaphore_mem>>)
      %c5_i32_75 = arith.constant 5 : i32
      %136 = arith.addi %80, %c5_i32_75 : i32
      %137 = arith.index_cast %arg0 : i32 to index
      %138 = arith.index_cast %136 : i32 to index
      %139 = memref.load %arg2[%137, %138] : memref<2x32xi32, #tpu.memory_space<smem>>
      %c0_i32_76 = arith.constant 0 : i32
      %c63_i32_77 = arith.constant 63 : i32
      %140 = arith.maxsi %c0_i32_76, %139 : i32
      %141 = arith.minsi %c63_i32_77, %140 : i32
      %c0_i32_78 = arith.constant 0 : i32
      %142 = tpu.memref_slice %arg3[%141, %c0_i32_78] : memref<64x128xf32, #tpu.memory_space<any>> -> memref<1x128xf32, #tpu.memory_space<any>>
      %c5_i32_79 = arith.constant 5 : i32
      %c0_i32_80 = arith.constant 0 : i32
      %143 = tpu.memref_slice %arg8[%79, %c5_i32_79, %c0_i32_80] : memref<2x8x128xf32, #tpu.memory_space<vmem>> -> memref<1x1x128xf32, #tpu.memory_space<vmem>>
      %144 = tpu.memref_squeeze %143 : memref<1x1x128xf32, #tpu.memory_space<vmem>> -> memref<1x128xf32, #tpu.memory_space<vmem>>
      %145 = tpu.memref_slice %arg9[%79] : memref<2x!tpu.dma_semaphore, #tpu.memory_space<semaphore_mem>> -> memref<1x!tpu.dma_semaphore, #tpu.memory_space<semaphore_mem>>
      %146 = tpu.memref_squeeze %145 : memref<1x!tpu.dma_semaphore, #tpu.memory_space<semaphore_mem>> -> memref<!tpu.dma_semaphore, #tpu.memory_space<semaphore_mem>>
      tpu.enqueue_dma source(%142 : memref<1x128xf32, #tpu.memory_space<any>>) target(%144 : memref<1x128xf32, #tpu.memory_space<vmem>>) target_semaphore(%146 : memref<!tpu.dma_semaphore, #tpu.memory_space<semaphore_mem>>)
      %c6_i32_81 = arith.constant 6 : i32
      %147 = arith.addi %80, %c6_i32_81 : i32
      %148 = arith.index_cast %arg0 : i32 to index
      %149 = arith.index_cast %147 : i32 to index
      %150 = memref.load %arg2[%148, %149] : memref<2x32xi32, #tpu.memory_space<smem>>
      %c0_i32_82 = arith.constant 0 : i32
      %c63_i32_83 = arith.constant 63 : i32
      %151 = arith.maxsi %c0_i32_82, %150 : i32
      %152 = arith.minsi %c63_i32_83, %151 : i32
      %c0_i32_84 = arith.constant 0 : i32
      %153 = tpu.memref_slice %arg3[%152, %c0_i32_84] : memref<64x128xf32, #tpu.memory_space<any>> -> memref<1x128xf32, #tpu.memory_space<any>>
      %c6_i32_85 = arith.constant 6 : i32
      %c0_i32_86 = arith.constant 0 : i32
      %154 = tpu.memref_slice %arg8[%79, %c6_i32_85, %c0_i32_86] : memref<2x8x128xf32, #tpu.memory_space<vmem>> -> memref<1x1x128xf32, #tpu.memory_space<vmem>>
      %155 = tpu.memref_squeeze %154 : memref<1x1x128xf32, #tpu.memory_space<vmem>> -> memref<1x128xf32, #tpu.memory_space<vmem>>
      %156 = tpu.memref_slice %arg9[%79] : memref<2x!tpu.dma_semaphore, #tpu.memory_space<semaphore_mem>> -> memref<1x!tpu.dma_semaphore, #tpu.memory_space<semaphore_mem>>
      %157 = tpu.memref_squeeze %156 : memref<1x!tpu.dma_semaphore, #tpu.memory_space<semaphore_mem>> -> memref<!tpu.dma_semaphore, #tpu.memory_space<semaphore_mem>>
      tpu.enqueue_dma source(%153 : memref<1x128xf32, #tpu.memory_space<any>>) target(%155 : memref<1x128xf32, #tpu.memory_space<vmem>>) target_semaphore(%157 : memref<!tpu.dma_semaphore, #tpu.memory_space<semaphore_mem>>)
      %c7_i32_87 = arith.constant 7 : i32
      %158 = arith.addi %80, %c7_i32_87 : i32
      %159 = arith.index_cast %arg0 : i32 to index
      %160 = arith.index_cast %158 : i32 to index
      %161 = memref.load %arg2[%159, %160] : memref<2x32xi32, #tpu.memory_space<smem>>
      %c0_i32_88 = arith.constant 0 : i32
      %c63_i32_89 = arith.constant 63 : i32
      %162 = arith.maxsi %c0_i32_88, %161 : i32
      %163 = arith.minsi %c63_i32_89, %162 : i32
      %c0_i32_90 = arith.constant 0 : i32
      %164 = tpu.memref_slice %arg3[%163, %c0_i32_90] : memref<64x128xf32, #tpu.memory_space<any>> -> memref<1x128xf32, #tpu.memory_space<any>>
      %c7_i32_91 = arith.constant 7 : i32
      %c0_i32_92 = arith.constant 0 : i32
      %165 = tpu.memref_slice %arg8[%79, %c7_i32_91, %c0_i32_92] : memref<2x8x128xf32, #tpu.memory_space<vmem>> -> memref<1x1x128xf32, #tpu.memory_space<vmem>>
      %166 = tpu.memref_squeeze %165 : memref<1x1x128xf32, #tpu.memory_space<vmem>> -> memref<1x128xf32, #tpu.memory_space<vmem>>
      %167 = tpu.memref_slice %arg9[%79] : memref<2x!tpu.dma_semaphore, #tpu.memory_space<semaphore_mem>> -> memref<1x!tpu.dma_semaphore, #tpu.memory_space<semaphore_mem>>
      %168 = tpu.memref_squeeze %167 : memref<1x!tpu.dma_semaphore, #tpu.memory_space<semaphore_mem>> -> memref<!tpu.dma_semaphore, #tpu.memory_space<semaphore_mem>>
      tpu.enqueue_dma source(%164 : memref<1x128xf32, #tpu.memory_space<any>>) target(%166 : memref<1x128xf32, #tpu.memory_space<vmem>>) target_semaphore(%168 : memref<!tpu.dma_semaphore, #tpu.memory_space<semaphore_mem>>)
    } else {
    }
    %c0_i32_2 = arith.constant 0 : i32
    %c0_i32_3 = arith.constant 0 : i32
    %8 = tpu.memref_slice %arg3[%c0_i32_2, %c0_i32_3] : memref<64x128xf32, #tpu.memory_space<any>> -> memref<1x128xf32, #tpu.memory_space<any>>
    %c0_i32_4 = arith.constant 0 : i32
    %c0_i32_5 = arith.constant 0 : i32
    %9 = tpu.memref_slice %arg8[%0, %c0_i32_4, %c0_i32_5] : memref<2x8x128xf32, #tpu.memory_space<vmem>> -> memref<1x1x128xf32, #tpu.memory_space<vmem>>
    %10 = tpu.memref_squeeze %9 : memref<1x1x128xf32, #tpu.memory_space<vmem>> -> memref<1x128xf32, #tpu.memory_space<vmem>>
    %11 = tpu.memref_slice %arg9[%0] : memref<2x!tpu.dma_semaphore, #tpu.memory_space<semaphore_mem>> -> memref<1x!tpu.dma_semaphore, #tpu.memory_space<semaphore_mem>>
    %12 = tpu.memref_squeeze %11 : memref<1x!tpu.dma_semaphore, #tpu.memory_space<semaphore_mem>> -> memref<!tpu.dma_semaphore, #tpu.memory_space<semaphore_mem>>
    tpu.wait_dma2 semaphore(%12 : memref<!tpu.dma_semaphore, #tpu.memory_space<semaphore_mem>>) src(%8 : memref<1x128xf32, #tpu.memory_space<any>>) dst(%10 : memref<1x128xf32, #tpu.memory_space<vmem>>)
    %c0_i32_6 = arith.constant 0 : i32
    %c0_i32_7 = arith.constant 0 : i32
    %13 = tpu.memref_slice %arg3[%c0_i32_6, %c0_i32_7] : memref<64x128xf32, #tpu.memory_space<any>> -> memref<1x128xf32, #tpu.memory_space<any>>
    %c1_i32_8 = arith.constant 1 : i32
    %c0_i32_9 = arith.constant 0 : i32
    %14 = tpu.memref_slice %arg8[%0, %c1_i32_8, %c0_i32_9] : memref<2x8x128xf32, #tpu.memory_space<vmem>> -> memref<1x1x128xf32, #tpu.memory_space<vmem>>
    %15 = tpu.memref_squeeze %14 : memref<1x1x128xf32, #tpu.memory_space<vmem>> -> memref<1x128xf32, #tpu.memory_space<vmem>>
    %16 = tpu.memref_slice %arg9[%0] : memref<2x!tpu.dma_semaphore, #tpu.memory_space<semaphore_mem>> -> memref<1x!tpu.dma_semaphore, #tpu.memory_space<semaphore_mem>>
    %17 = tpu.memref_squeeze %16 : memref<1x!tpu.dma_semaphore, #tpu.memory_space<semaphore_mem>> -> memref<!tpu.dma_semaphore, #tpu.memory_space<semaphore_mem>>
    tpu.wait_dma2 semaphore(%17 : memref<!tpu.dma_semaphore, #tpu.memory_space<semaphore_mem>>) src(%13 : memref<1x128xf32, #tpu.memory_space<any>>) dst(%15 : memref<1x128xf32, #tpu.memory_space<vmem>>)
    %c0_i32_10 = arith.constant 0 : i32
    %c0_i32_11 = arith.constant 0 : i32
    %18 = tpu.memref_slice %arg3[%c0_i32_10, %c0_i32_11] : memref<64x128xf32, #tpu.memory_space<any>> -> memref<1x128xf32, #tpu.memory_space<any>>
    %c2_i32_12 = arith.constant 2 : i32
    %c0_i32_13 = arith.constant 0 : i32
    %19 = tpu.memref_slice %arg8[%0, %c2_i32_12, %c0_i32_13] : memref<2x8x128xf32, #tpu.memory_space<vmem>> -> memref<1x1x128xf32, #tpu.memory_space<vmem>>
    %20 = tpu.memref_squeeze %19 : memref<1x1x128xf32, #tpu.memory_space<vmem>> -> memref<1x128xf32, #tpu.memory_space<vmem>>
    %21 = tpu.memref_slice %arg9[%0] : memref<2x!tpu.dma_semaphore, #tpu.memory_space<semaphore_mem>> -> memref<1x!tpu.dma_semaphore, #tpu.memory_space<semaphore_mem>>
    %22 = tpu.memref_squeeze %21 : memref<1x!tpu.dma_semaphore, #tpu.memory_space<semaphore_mem>> -> memref<!tpu.dma_semaphore, #tpu.memory_space<semaphore_mem>>
    tpu.wait_dma2 semaphore(%22 : memref<!tpu.dma_semaphore, #tpu.memory_space<semaphore_mem>>) src(%18 : memref<1x128xf32, #tpu.memory_space<any>>) dst(%20 : memref<1x128xf32, #tpu.memory_space<vmem>>)
    %c0_i32_14 = arith.constant 0 : i32
    %c0_i32_15 = arith.constant 0 : i32
    %23 = tpu.memref_slice %arg3[%c0_i32_14, %c0_i32_15] : memref<64x128xf32, #tpu.memory_space<any>> -> memref<1x128xf32, #tpu.memory_space<any>>
    %c3_i32 = arith.constant 3 : i32
    %c0_i32_16 = arith.constant 0 : i32
    %24 = tpu.memref_slice %arg8[%0, %c3_i32, %c0_i32_16] : memref<2x8x128xf32, #tpu.memory_space<vmem>> -> memref<1x1x128xf32, #tpu.memory_space<vmem>>
    %25 = tpu.memref_squeeze %24 : memref<1x1x128xf32, #tpu.memory_space<vmem>> -> memref<1x128xf32, #tpu.memory_space<vmem>>
    %26 = tpu.memref_slice %arg9[%0] : memref<2x!tpu.dma_semaphore, #tpu.memory_space<semaphore_mem>> -> memref<1x!tpu.dma_semaphore, #tpu.memory_space<semaphore_mem>>
    %27 = tpu.memref_squeeze %26 : memref<1x!tpu.dma_semaphore, #tpu.memory_space<semaphore_mem>> -> memref<!tpu.dma_semaphore, #tpu.memory_space<semaphore_mem>>
    tpu.wait_dma2 semaphore(%27 : memref<!tpu.dma_semaphore, #tpu.memory_space<semaphore_mem>>) src(%23 : memref<1x128xf32, #tpu.memory_space<any>>) dst(%25 : memref<1x128xf32, #tpu.memory_space<vmem>>)
    %c0_i32_17 = arith.constant 0 : i32
    %c0_i32_18 = arith.constant 0 : i32
    %28 = tpu.memref_slice %arg3[%c0_i32_17, %c0_i32_18] : memref<64x128xf32, #tpu.memory_space<any>> -> memref<1x128xf32, #tpu.memory_space<any>>
    %c4_i32_19 = arith.constant 4 : i32
    %c0_i32_20 = arith.constant 0 : i32
    %29 = tpu.memref_slice %arg8[%0, %c4_i32_19, %c0_i32_20] : memref<2x8x128xf32, #tpu.memory_space<vmem>> -> memref<1x1x128xf32, #tpu.memory_space<vmem>>
    %30 = tpu.memref_squeeze %29 : memref<1x1x128xf32, #tpu.memory_space<vmem>> -> memref<1x128xf32, #tpu.memory_space<vmem>>
    %31 = tpu.memref_slice %arg9[%0] : memref<2x!tpu.dma_semaphore, #tpu.memory_space<semaphore_mem>> -> memref<1x!tpu.dma_semaphore, #tpu.memory_space<semaphore_mem>>
    %32 = tpu.memref_squeeze %31 : memref<1x!tpu.dma_semaphore, #tpu.memory_space<semaphore_mem>> -> memref<!tpu.dma_semaphore, #tpu.memory_space<semaphore_mem>>
    tpu.wait_dma2 semaphore(%32 : memref<!tpu.dma_semaphore, #tpu.memory_space<semaphore_mem>>) src(%28 : memref<1x128xf32, #tpu.memory_space<any>>) dst(%30 : memref<1x128xf32, #tpu.memory_space<vmem>>)
    %c0_i32_21 = arith.constant 0 : i32
    %c0_i32_22 = arith.constant 0 : i32
    %33 = tpu.memref_slice %arg3[%c0_i32_21, %c0_i32_22] : memref<64x128xf32, #tpu.memory_space<any>> -> memref<1x128xf32, #tpu.memory_space<any>>
    %c5_i32 = arith.constant 5 : i32
    %c0_i32_23 = arith.constant 0 : i32
    %34 = tpu.memref_slice %arg8[%0, %c5_i32, %c0_i32_23] : memref<2x8x128xf32, #tpu.memory_space<vmem>> -> memref<1x1x128xf32, #tpu.memory_space<vmem>>
    %35 = tpu.memref_squeeze %34 : memref<1x1x128xf32, #tpu.memory_space<vmem>> -> memref<1x128xf32, #tpu.memory_space<vmem>>
    %36 = tpu.memref_slice %arg9[%0] : memref<2x!tpu.dma_semaphore, #tpu.memory_space<semaphore_mem>> -> memref<1x!tpu.dma_semaphore, #tpu.memory_space<semaphore_mem>>
    %37 = tpu.memref_squeeze %36 : memref<1x!tpu.dma_semaphore, #tpu.memory_space<semaphore_mem>> -> memref<!tpu.dma_semaphore, #tpu.memory_space<semaphore_mem>>
    tpu.wait_dma2 semaphore(%37 : memref<!tpu.dma_semaphore, #tpu.memory_space<semaphore_mem>>) src(%33 : memref<1x128xf32, #tpu.memory_space<any>>) dst(%35 : memref<1x128xf32, #tpu.memory_space<vmem>>)
    %c0_i32_24 = arith.constant 0 : i32
    %c0_i32_25 = arith.constant 0 : i32
    %38 = tpu.memref_slice %arg3[%c0_i32_24, %c0_i32_25] : memref<64x128xf32, #tpu.memory_space<any>> -> memref<1x128xf32, #tpu.memory_space<any>>
    %c6_i32 = arith.constant 6 : i32
    %c0_i32_26 = arith.constant 0 : i32
    %39 = tpu.memref_slice %arg8[%0, %c6_i32, %c0_i32_26] : memref<2x8x128xf32, #tpu.memory_space<vmem>> -> memref<1x1x128xf32, #tpu.memory_space<vmem>>
    %40 = tpu.memref_squeeze %39 : memref<1x1x128xf32, #tpu.memory_space<vmem>> -> memref<1x128xf32, #tpu.memory_space<vmem>>
    %41 = tpu.memref_slice %arg9[%0] : memref<2x!tpu.dma_semaphore, #tpu.memory_space<semaphore_mem>> -> memref<1x!tpu.dma_semaphore, #tpu.memory_space<semaphore_mem>>
    %42 = tpu.memref_squeeze %41 : memref<1x!tpu.dma_semaphore, #tpu.memory_space<semaphore_mem>> -> memref<!tpu.dma_semaphore, #tpu.memory_space<semaphore_mem>>
    tpu.wait_dma2 semaphore(%42 : memref<!tpu.dma_semaphore, #tpu.memory_space<semaphore_mem>>) src(%38 : memref<1x128xf32, #tpu.memory_space<any>>) dst(%40 : memref<1x128xf32, #tpu.memory_space<vmem>>)
    %c0_i32_27 = arith.constant 0 : i32
    %c0_i32_28 = arith.constant 0 : i32
    %43 = tpu.memref_slice %arg3[%c0_i32_27, %c0_i32_28] : memref<64x128xf32, #tpu.memory_space<any>> -> memref<1x128xf32, #tpu.memory_space<any>>
    %c7_i32 = arith.constant 7 : i32
    %c0_i32_29 = arith.constant 0 : i32
    %44 = tpu.memref_slice %arg8[%0, %c7_i32, %c0_i32_29] : memref<2x8x128xf32, #tpu.memory_space<vmem>> -> memref<1x1x128xf32, #tpu.memory_space<vmem>>
    %45 = tpu.memref_squeeze %44 : memref<1x1x128xf32, #tpu.memory_space<vmem>> -> memref<1x128xf32, #tpu.memory_space<vmem>>
    %46 = tpu.memref_slice %arg9[%0] : memref<2x!tpu.dma_semaphore, #tpu.memory_space<semaphore_mem>> -> memref<1x!tpu.dma_semaphore, #tpu.memory_space<semaphore_mem>>
    %47 = tpu.memref_squeeze %46 : memref<1x!tpu.dma_semaphore, #tpu.memory_space<semaphore_mem>> -> memref<!tpu.dma_semaphore, #tpu.memory_space<semaphore_mem>>
    tpu.wait_dma2 semaphore(%47 : memref<!tpu.dma_semaphore, #tpu.memory_space<semaphore_mem>>) src(%43 : memref<1x128xf32, #tpu.memory_space<any>>) dst(%45 : memref<1x128xf32, #tpu.memory_space<vmem>>)
    %48 = arith.index_cast %0 : i32 to index
    %c0 = arith.constant 0 : index
    %c0_30 = arith.constant 0 : index
    %49 = vector.load %arg8[%48, %c0, %c0_30] : memref<2x8x128xf32, #tpu.memory_space<vmem>>, vector<1x8x128xf32>
    %50 = vector.shape_cast %49 : vector<1x8x128xf32> to vector<8x128xf32>
    %c0_31 = arith.constant 0 : index
    %c0_32 = arith.constant 0 : index
    %51 = vector.load %arg4[%c0_31, %c0_32] : memref<8x128xf32, #tpu.memory_space<vmem>>, vector<8x128xf32>
    %52 = arith.addf %50, %51 : vector<8x128xf32>
    %cst = arith.constant dense<0.000000e+00> : vector<8xf32>
    %53 = vector.multi_reduction <add>, %52, %cst [1] : vector<8x128xf32> to vector<8xf32>
    %54 = vector.shape_cast %53 : vector<8xf32> to vector<8x1xf32>
    %cst_33 = arith.constant 1.280000e+02 : f32
    %55 = vector.broadcast %cst_33 : f32 to vector<8x1xf32>
    %56 = arith.divf %54, %55 : vector<8x1xf32>
    %57 = vector.broadcast %56 : vector<8x1xf32> to vector<8x128xf32>
    %58 = arith.subf %52, %57 : vector<8x128xf32>
    %59 = arith.mulf %58, %58 : vector<8x128xf32>
    %cst_34 = arith.constant dense<0.000000e+00> : vector<8xf32>
    %60 = vector.multi_reduction <add>, %59, %cst_34 [1] : vector<8x128xf32> to vector<8xf32>
    %61 = vector.shape_cast %60 : vector<8xf32> to vector<8x1xf32>
    %cst_35 = arith.constant 1.280000e+02 : f32
    %62 = vector.broadcast %cst_35 : f32 to vector<8x1xf32>
    %63 = arith.divf %61, %62 : vector<8x1xf32>
    %cst_36 = arith.constant 9.99999974E-6 : f32
    %64 = vector.broadcast %cst_36 : f32 to vector<8x1xf32>
    %65 = arith.addf %63, %64 : vector<8x1xf32>
    %66 = math.rsqrt %65 : vector<8x1xf32>
    %67 = vector.broadcast %66 : vector<8x1xf32> to vector<8x128xf32>
    %68 = arith.mulf %58, %67 : vector<8x128xf32>
    %c0_37 = arith.constant 0 : index
    %c0_38 = arith.constant 0 : index
    %69 = vector.load %arg5[%c0_37, %c0_38] : memref<1x128xf32, #tpu.memory_space<vmem>>, vector<1x128xf32>
    %c0_39 = arith.constant 0 : index
    %c0_40 = arith.constant 0 : index
    %70 = vector.load %arg6[%c0_39, %c0_40] : memref<1x128xf32, #tpu.memory_space<vmem>>, vector<1x128xf32>
    %71 = vector.broadcast %69 : vector<1x128xf32> to vector<8x128xf32>
    %72 = arith.mulf %68, %71 : vector<8x128xf32>
    %73 = vector.broadcast %70 : vector<1x128xf32> to vector<8x128xf32>
    %74 = arith.addf %72, %73 : vector<8x128xf32>
    %c0_41 = arith.constant 0 : index
    %c0_42 = arith.constant 0 : index
    %c0_43 = arith.constant 0 : index
    %75 = vector.load %arg7[%c0_41, %c0_42, %c0_43] : memref<1x8x128xf32, #tpu.memory_space<vmem>>, vector<1x8x128xf32>
    %76 = vector.shape_cast %75 : vector<1x8x128xf32> to vector<8x128xf32>
    %77 = vector.shape_cast %74 : vector<8x128xf32> to vector<1x8x128xf32>
    tpu.vector_store %arg7[%c0_41, %c0_42, %c0_43], %77 {strides = array<i32>} : memref<1x8x128xf32, #tpu.memory_space<vmem>>, vector<1x8x128xf32>,
    return
  }
  func.func @transform_1(%arg0: i32, %arg1: i32, %arg2: memref<2x32xi32, #tpu.memory_space<smem>>) -> (i32, i32) {
    %c0_i32 = arith.constant 0 : i32
    %c0_i32_0 = arith.constant 0 : i32
    return %arg1, %c0_i32 : i32, i32
  }
  func.func @transform_2(%arg0: i32, %arg1: i32, %arg2: memref<2x32xi32, #tpu.memory_space<smem>>) -> (i32, i32) {
    %c0_i32 = arith.constant 0 : i32
    %c0_i32_0 = arith.constant 0 : i32
    %c0_i32_1 = arith.constant 0 : i32
    return %c0_i32, %c0_i32_0 : i32, i32
  }
  func.func @transform_3(%arg0: i32, %arg1: i32, %arg2: memref<2x32xi32, #tpu.memory_space<smem>>) -> (i32, i32) {
    %c0_i32 = arith.constant 0 : i32
    %c0_i32_0 = arith.constant 0 : i32
    %c0_i32_1 = arith.constant 0 : i32
    return %c0_i32, %c0_i32_0 : i32, i32
  }
  func.func @transform_4(%arg0: i32, %arg1: i32, %arg2: memref<2x32xi32, #tpu.memory_space<smem>>) -> (i32, i32, i32) {
    %c0_i32 = arith.constant 0 : i32
    %c0_i32_0 = arith.constant 0 : i32
    return %arg0, %arg1, %c0_i32 : i32, i32, i32
  }
}

</mosaic_0001>

<bundles_post_ra>
// kernel: tpu_custom_call.1
= control target key start
LH: loop header
LB: loop body
LE: loop exit
PB: predicated region body
PF: predicated region fallthrough
CT: control target
= control target key end

     0   :  { %s1728_s21 = smov [#allocation5]   ;;  %s2321_s0 = inlined_call_operand.hbm [shape: s32[2,32], index: 0, kind: input, shape index: {}]   ;;  %s2322_s1 = inlined_call_operand.hbm [shape: f32[64,128], index: 1, kind: input, shape index: {}]   ;;  %s2323_s2 = inlined_call_operand.hbm [shape: f32[32,128], index: 2, kind: input, shape index: {}]   ;;  %s2324_s3 = inlined_call_operand.vmem [shape: f32[1,128], index: 3, kind: input, shape index: {}]   ;;  %s2325_s4 = inlined_call_operand.vmem [shape: f32[1,128], index: 4, kind: input, shape index: {}]   ;;  %s2326_s5 = inlined_call_operand.hbm [shape: f32[2,32,128], index: 5, kind: output, shape index: {}]  }
   0x1   :  { %2345 = sst [smem:[#allocation71_spill]] %s2323_s2  ;;  %s11_s20 = sshll.u32 %s2321_s0, 4  ;;  %s12_s20 = int_to_ptr.hbm [resolvable:$true] %s11_s20 }
   0x2   :  { %2346 = sst [smem:[#allocation72_spill]] %s2325_s4 }
   0x3   :  { %2347 = sst [smem:[#allocation73_spill]] %s2326_s5 }
   0x4   :  { %14 = dma.hbm_to_smem %s12_s20, 32, %s1728_s21, [#allocation4] }
   0x5   :  { %1672 = dma.done.wait [#allocation4], 32 }
   0x6   :  { %1673 = vsyncadd [#allocation4], 4294967264 }
   0x7   :  { %17 = sfence }
   0x8   :  { %18 = vsyncpa [#allocation7], 0 }
   0x9   :  { %20 = vsyncpa [#allocation7 + $0x1], 0 }
   0xa   :  { %21 = vsyncpa [#allocation8], 0 }
   0xb   :  { %23 = vsyncpa [#allocation8 + $0x1], 0  ;;  %s1772_s22 = smov 0   ;;  %s1774_s23 = smov 0  }
   0xc   :  { %s1776_s24 = smov 0   ;;  %s1778_s25 = smov 0  }
   0xd   :  { %s1780_s26 = smov 0   ;;  %s1782_s0 = smov 0  }
   0xe   :  { %s1784_s27 = smov 0   ;;  %s1786_s28 = smov 0  }
   0xf   :  { %s1788_s29 = smov 0   ;;  %s1790_s30 = smov 0  }
  0x10   :  { %s1792_s6 = smov 0  }
  0x11 LB: > { %2348 = sst [smem:[#allocation56_spill]] %s1686_s22  ;;  %s846_s7 = sadd.s32 4294967295, %s1726_s6   ;;  %s1726_s6 = sphi %s1792_s6, %s29_s6   ;;  %s1722_s30 = sphi %s1790_s30, %s2392_s30   ;;  %s1718_s29 = sphi %s1788_s29, %s2391_s29   ;;  %s1714_s28 = sphi %s1786_s28, %s2390_s28   ;;  %s1710_s27 = sphi %s1784_s27, %s2389_s27   ;;  %s1706_s0 = sphi %s1782_s0, %s2388_s0   ;;  %s1702_s26 = sphi %s1780_s26, %s2395_s26   ;;  %s1698_s25 = sphi %s1778_s25, %s2386_s25   ;;  %s1694_s24 = sphi %s1776_s24, %s2385_s24   ;;  %s1690_s23 = sphi %s1774_s23, %s2394_s23   ;;  %s1686_s22 = sphi %s1772_s22, %s2393_s22  }
  0x12   : > { %2349 = sst [smem:[#allocation57_spill]] %s1694_s24  ;;  %s847_s8 = sadd.s32 4294967294, %s1726_s6  }
  0x13   : > { %2350 = sst [smem:[#allocation58_spill]] %s1702_s26  ;;  %s38_s9 = sadd.s32 1, %s1718_s29 }
  0x14   : > { %2351 = sst [smem:[#allocation59_spill]] %s1706_s0  ;;  %s41_s10 = sadd.s32 1, %s1722_s30 }
  0x15   : > { %2352 = sst [smem:[#allocation60_spill]] %s1718_s29  ;;  %p39_p0 = scmp.ge.s32.totalorder %s38_s9, 4 }
  0x16   : > { %2353 = sst [smem:[#allocation61_spill]] %s1722_s30  ;;  %s48_s11 = sadd.s32 1, %s1706_s0 }
  0x17   : > { %2354 = sst [smem:[#allocation62_spill]] %s1726_s6  ;;  %p55_p1 = scmp.ne.s32.totalorder %s1706_s0, %s1702_s26 }
  0x18   : > { %p56_p2 = scmp.eq.s32.totalorder %s1726_s6, 0  ;;  %s2397_s9 = smov (%p39_p0, %s38_s9), 0 }
  0x19   : > { %2355 = sst [smem:[#allocation63_spill]] %s2397_s9  ;;  %s2399_s10 = smov (!%p39_p0, %s41_s10), %s1722_s30 }
  0x1a   : > { %s45_s12 = ssub.s32 %s1718_s29, %s2397_s9  ;;  %p1838_p3 = por %p56_p2, %p55_p1 }
  0x1b   : > { %p43_p4 = scmp.ge.s32.totalorder %s2399_s10, 2  ;;  %p46_p5 = scmp.eq.s32.totalorder %s45_s12, 0 }
  0x1c   : > { %p61_p6 = scmp.ne.s32.totalorder %s1702_s26, %s1698_s25  ;;  %p62_p7 = scmp.eq.s32.totalorder %s846_s7, 0 }
  0x1d   : > { %s2401_s10 = smov (%p43_p4, %s2399_s10), 0  ;;  %s118_s18 = sadd.s32 1, %s1694_s24 }
  0x1e   : > { %2357 = sst [smem:[#allocation64_spill]] %s2401_s10  ;;  %p1848_p8 = por %p62_p7, %p61_p6 }
  0x1f   : > { %s1846_s14 = scalar_select %p46_p5, %s1706_s0, %s48_s11  }
  0x20   : > { %s113_s16 = ssub.s32 %s1722_s30, %s2401_s10  ;;  %p128_p10 = scmp.ne.s32.totalorder %s1694_s24, %s1690_s23 }
  0x21   : > { %2358 = sst [smem:[#allocation65_spill]] %s1846_s14  ;;  %s115_s17 = sor.u32 %s113_s16, %s45_s12 }
  0x22   : > { %p116_p9 = scmp.eq.s32.totalorder %s115_s17, 0  ;;  %p129_p11 = scmp.eq.s32.totalorder %s846_s7, 7 }
  0x23   : > { %p134_p12 = scmp.ne.s32.totalorder %s1690_s23, %s1686_s22  ;;  %p135_p0 = scmp.eq.s32.totalorder %s847_s8, 7 }
  0x24   : > { %s1860_s19 = scalar_select %p116_p9, %s1694_s24, %s118_s18  }
  0x25   : > { %p1862_p13 = por %p129_p11, %p128_p10  ;;  %p1035_p1 = scmp.lt.s32.totalorder %s1726_s6, 8 }
  0x26   : > { %2360 = sst [smem:[#allocation66_spill]] %s1860_s19  ;;  %p1867_p2 = por %p135_p0, %p134_p12 }
  0x27   : > { %s2361_s20 = scalar_select %p1862_p13, 1, 0 }
  0x28   : > { %s2363_s21 = scalar_select %p1867_p2, 1, 0 }
  0x29   : > { %2362 = sst [smem:[#allocation67_spill]] %s2361_s20  ;;  %s161_s25 = sand.u32 1, %s1706_s0  }
  0x2a   : > { %2364 = sst [smem:[#allocation68_spill]] %s2363_s21  ;;  %s850_s11 = sshll.u32 %s161_s25, 3 }
  0x2b   : > { %s851_s12 = sshll.u32 %s1718_s29, 3  ;;  %s2365_s2 = sld [smem:[#allocation71_spill]] }
  0x2c   : > { %s165_s18 = scalar_lea.vmem [#allocation6], %s850_s11  ;;  %p1028_p4 = pnand %p1035_p1, %p1838_p3 }
  0x2d   : > { %s173_s10 = sshll.u32 %s165_s18, 4  ;;  %p852_p5 = scmp.ge.s32.totalorder %s1726_s6, 1  ;;  %s174_s10 = int_to_ptr.vmem [resolvable:$true] %s173_s10 }
  0x2e   : > { %p178_p6 = scmp.lt.s32.totalorder %s1726_s6, 9  ;;  %s162_s8 = scalar_lea.sflag [#allocation7], %s161_s25 }
  0x30   : > { %p179_p7 = pnand %p852_p5, %p178_p6 }
  0x31   : > { %s169_s17 = scalar_lea.hbm %s2365_s2, %s851_s12 }
  0x32   : > { %s171_s9 = sshll.u32 %s169_s17, 4  ;;  %182 = sbr.rel (%p179_p7) target bundleno = 699 (0x2bb), region = 32  ;;  %s172_s9 = int_to_ptr.hbm [resolvable:$true] %s171_s9 }
  0x33   : > { %1030 = dma.hbm_to_vmem [thread:$0]  (!%p1028_p4), %s172_s9, 128, %s174_s10, %s162_s8  }
  0x37   : > { %s184_s30 = sand.u32 1, %s1702_s26  }
  0x38   : > { %s1881_s29 = sshll.u32 %s184_s30, 3  ;;  %s185_s12 = scalar_lea.sflag [#allocation7], %s184_s30 }
  0x39   : > { %1675 = dma.done.wait (%p1848_p8), %s185_s12, 128  }
  0x3a   : > { %1677 = vsyncadd (%p1848_p8), %s185_s12, 4294967168  ;;  %s2331_s9 = sand.u32 1, %s1690_s23   ;;  %p212_p3 = scmp.lt.s32.totalorder %s1710_s27, 0 }
  0x3b   : > { %s1892_s30 = sshll.u32 %s2331_s9, 3  ;;  %s213_s10 = ssub.s32 0, %s1710_s27 }
  0x3c   : > { %s855_s13 = smin.u32 %s1710_s27, %s213_s10  ;;  %p1036_p8 = scmp.eq.s32.totalorder %s1710_s27, 0 }
  0x3d   : > { %s215_s15 = sand.u32 1, %s855_s13   ;;  %s1900_s7 = sshll.u32 %s1714_s28, 7 }
  0x3e   : > { %s216_s25 = ssub.s32 0, %s215_s15  ;;  %s242_s18 = sadd.s32 1, %s1900_s7 }
  0x3f   : > { %s2403_s25 = smov (!%p212_p3, %s216_s25), %s215_s15  ;;  %s1729_s12 = smov [#allocation2]  }
  0x40   : > { %s1001_s16 = scalar_select %p1036_p8, [#allocation5], [#allocation44] }
  0x41   : > { %s1002_s17 = scalar_select %p1036_p8, %s1900_s7, 0 }
  0x42   : > { %s1908_s10 = sshll.u32 %s1729_s12, 4  ;;  %s2405_s18 = smov (!%p1036_p8, %s242_s18), 0 }
  0x43   : > { %s223_s8 = sld [smem:[%s1001_s16 + %s1002_s17]]  ;;  %s1730_s9 = smov [#allocation2 + $0x1]  }
  0x44   : > { %2366 = sst [smem:[#allocation69_spill]] %s1908_s10  ;;  %s1917_s11 = sshll.u32 %s1730_s9, 4  ;;  %s260_s11 = int_to_ptr.vmem [resolvable:$true] %s1917_s11 }
  0x45   : > { %s1004_s13 = scalar_select %p1036_p8, [#allocation5], [#allocation45] }
  0x46   : > { %s263_s2 = sadd.s32 2, %s1900_s7  ;;  %s1731_s9 = smov [#allocation2 + $0x2]  }
  0x47   : > { %s1915_s15 = sld [smem:[%s1004_s13 + %s2405_s18]]  ;;  %s2409_s2 = smov (!%p1036_p8, %s263_s2), 0 }
  0x48   : > { %s1007_s16 = scalar_select %p1036_p8, [#allocation5], [#allocation46] }
  0x49   : > { %p224_p9 = scmp.gt.s32.totalorder %s223_s8, 0  ;;  %p858_p10 = scmp.lt.s32.totalorder %s223_s8, 63 }
  0x4a   : > { %s1928_s13 = sld [smem:[%s1007_s16 + %s2409_s2]]  ;;  %s1931_s14 = sshll.u32 %s1731_s9, 4 }
  0x4b   : > { %s2407_s8 = smov (!%p224_p9, %s223_s8), 0  ;;  %2367 = sst [smem:[#allocation70_spill]] %s1931_s14 }
  0x4c   : > { %s2411_s8 = smov (!%p858_p10, %s2407_s8), 63  ;;  %s1938_s17 = scalar_lea.hbm %s2322_s1, 64 }
  0x4d   : > { %p244_p11 = scmp.gt.s32.totalorder %s1915_s15, 0  ;;  %s228_s18 = scalar_lea.hbm %s2322_s1, %s2411_s8 }
  0x4e   : > { %s236_s10 = sshll.u32 %s228_s18, 4  ;;  %p863_p12 = scmp.lt.s32.totalorder %s1915_s15, 63  ;;  %s237_s10 = int_to_ptr.hbm [resolvable:$true] %s236_s10 }
  0x4f   : > { %s1184_s0 = sshra.s32 %s237_s10, 4  ;;  %s1185_s0 = int_to_ptr.hbm [resolvable:$true] %s1184_s0 }
  0x50   : > { %s1186_s26 = scalar_lea.hbm %s1185_s0, 1  ;;  %p1191_p5 = scmp.lt.s32.totalorder %s1185_s0, %s2322_s1 }
  0x51   : > { %p1187_p0 = scmp.ne.s32.totalorder %s1185_s0, %s1186_s26  ;;  %p1192_p6 = scmp.lt.s32.totalorder %s1938_s17, %s1186_s26 }
  0x53   : > { %p1188_p1 = pnand %p1187_p0, %p1036_p8  ;;  %p1193_p7 = por %p1192_p6, %p1191_p5 }
  0x55   : > { %p1189_p4 = pneg %p1188_p1 }
  0x57   : > { %p1194_p3 = pnand %p1193_p7, %p1189_p4 }
  0x59   : > { %1197 = shalt.err (!%p1194_p3)  }
  0x5a   : > { %s2368_s16 = sld [smem:[#allocation69_spill]]  ;;  %s284_s26 = sadd.s32 3, %s1900_s7 }
  0x5b   : > { %s245_s24 = scalar_select %p244_p11, %s1915_s15, 0 }
  0x5c   : > { %p265_p9 = scmp.gt.s32.totalorder %s1928_s13, 0  ;;  %p868_p10 = scmp.lt.s32.totalorder %s1928_s13, 63 }
  0x5d   : > { %s2413_s24 = smov (!%p863_p12, %s245_s24), 63 }
  0x5e   : > { %s248_s18 = scalar_lea.hbm %s2322_s1, %s2413_s24 }
  0x5f   : > { %s257_s9 = sshll.u32 %s248_s18, 4  ;;  %s258_s9 = int_to_ptr.hbm [resolvable:$true] %s257_s9 }
  0x60   : > { %s2369_s12 = int_to_ptr.vmem [resolvable:$true] %s2368_s16  ;;  %s1212_s2 = sshra.s32 %s258_s9, 4  ;;  %s1213_s2 = int_to_ptr.hbm [resolvable:$true] %s1212_s2 }
  0x61   : > { %1003 = dma.hbm_to_vmem [thread:$0]  (%p1036_p8), %s237_s10, 16, %s2369_s12, [#allocation3] }
  0x62   : > { %s1214_s8 = scalar_lea.hbm %s1213_s2, 1  ;;  %p1219_p12 = scmp.lt.s32.totalorder %s1213_s2, %s2322_s1 }
  0x63   : > { %p1215_p0 = scmp.ne.s32.totalorder %s1213_s2, %s1214_s8  ;;  %p1220_p4 = scmp.lt.s32.totalorder %s1938_s17, %s1214_s8 }
  0x65   : > { %p1216_p11 = pnand %p1215_p0, %p1036_p8  ;;  %p1221_p5 = por %p1220_p4, %p1219_p12 }
  0x67   : > { %p1217_p1 = pneg %p1216_p11 }
  0x69   : > { %p1222_p6 = pnand %p1221_p5, %p1217_p1 }
  0x6b   : > { %1225 = shalt.err (!%p1222_p6)  }
  0x6c   : > { %1006 = dma.hbm_to_vmem [thread:$0]  (%p1036_p8), %s258_s9, 16, %s260_s11, [#allocation3] }
  0x6d   : > { %s266_s16 = scalar_select %p265_p9, %s1928_s13, 0 }
  0x6e   : > { %s1010_s12 = scalar_select %p1036_p8, [#allocation5], [#allocation47] }
  0x6f   : > { %s2415_s16 = smov (!%p868_p10, %s266_s16), 63  ;;  %s2417_s26 = smov (!%p1036_p8, %s284_s26), 0 }
  0x70   : > { %s269_s19 = scalar_lea.hbm %s2322_s1, %s2415_s16  ;;  %s1732_s18 = smov [#allocation2 + $0x3]  }
  0x71   : > { %s1981_s2 = sshll.u32 %s1732_s18, 4  ;;  %s278_s8 = sshll.u32 %s269_s19, 4  ;;  %s279_s8 = int_to_ptr.hbm [resolvable:$true] %s278_s8  ;;  %s302_s2 = int_to_ptr.vmem [resolvable:$true] %s1981_s2 }
  0x72   : > { %s285_s10 = sld [smem:[%s1010_s12 + %s2417_s26]]  ;;  %s305_s11 = sadd.s32 4, %s1900_s7 }
  0x73   : > { %s1240_s9 = sshra.s32 %s279_s8, 4  ;;  %s1241_s9 = int_to_ptr.hbm [resolvable:$true] %s1240_s9 }
  0x74   : > { %s1242_s15 = scalar_lea.hbm %s1241_s9, 1  ;;  %p1247_p10 = scmp.lt.s32.totalorder %s1241_s9, %s2322_s1 }
  0x75   : > { %p1243_p7 = scmp.ne.s32.totalorder %s1241_s9, %s1242_s15  ;;  %p1248_p0 = scmp.lt.s32.totalorder %s1938_s17, %s1242_s15 }
  0x77   : > { %p1244_p3 = pnand %p1243_p7, %p1036_p8  ;;  %p1249_p11 = por %p1248_p0, %p1247_p10 }
  0x79   : > { %p1245_p9 = pneg %p1244_p3 }
  0x7b   : > { %p1250_p1 = pnand %p1249_p11, %p1245_p9 }
  0x7d   : > { %1253 = shalt.err (!%p1250_p1)  }
  0x7e   : > { %s2370_s26 = sld [smem:[#allocation70_spill]]  ;;  %s2419_s11 = smov (!%p1036_p8, %s305_s11), 0 }
  0x7f   : > { %s1013_s12 = scalar_select %p1036_p8, [#allocation5], [#allocation48] }
  0x80   : > { %p286_p12 = scmp.gt.s32.totalorder %s285_s10, 0  ;;  %p873_p4 = scmp.lt.s32.totalorder %s285_s10, 63 }
  0x81   : > { %s306_s14 = sld [smem:[%s1013_s12 + %s2419_s11]]  ;;  %s326_s24 = sadd.s32 5, %s1900_s7 }
  0x82   : > { %s2421_s10 = smov (!%p286_p12, %s285_s10), 0  ;;  %s2425_s24 = smov (!%p1036_p8, %s326_s24), 0 }
  0x83   : > { %s1016_s0 = scalar_select %p1036_p8, [#allocation5], [#allocation49] }
  0x84   : > { %s2371_s16 = int_to_ptr.vmem [resolvable:$true] %s2370_s26  ;;  %s2423_s10 = smov (!%p873_p4, %s2421_s10), 63 }
  0x85   : > { %1009 = dma.hbm_to_vmem [thread:$0]  (%p1036_p8), %s279_s8, 16, %s2371_s16, [#allocation3] }
  0x86   : > { %s290_s8 = scalar_lea.hbm %s2322_s1, %s2423_s10  ;;  %s1733_s9 = smov [#allocation2 + $0x4]  }
  0x87   : > { %s2007_s15 = sshll.u32 %s1733_s9, 4  ;;  %s299_s13 = sshll.u32 %s290_s8, 4  ;;  %s300_s13 = int_to_ptr.hbm [resolvable:$true] %s299_s13  ;;  %s323_s15 = int_to_ptr.vmem [resolvable:$true] %s2007_s15 }
  0x88   : > { %p307_p5 = scmp.gt.s32.totalorder %s306_s14, 0  ;;  %p878_p6 = scmp.lt.s32.totalorder %s306_s14, 63 }
  0x89   : > { %s1268_s11 = sshra.s32 %s300_s13, 4  ;;  %s1269_s11 = int_to_ptr.hbm [resolvable:$true] %s1268_s11 }
  0x8a   : > { %s1270_s26 = scalar_lea.hbm %s1269_s11, 1  ;;  %p1275_p10 = scmp.lt.s32.totalorder %s1269_s11, %s2322_s1 }
  0x8b   : > { %p1271_p7 = scmp.ne.s32.totalorder %s1269_s11, %s1270_s26  ;;  %p1276_p0 = scmp.lt.s32.totalorder %s1938_s17, %s1270_s26 }
  0x8d   : > { %p1272_p3 = pnand %p1271_p7, %p1036_p8  ;;  %p1277_p11 = por %p1276_p0, %p1275_p10 }
  0x8f   : > { %p1273_p9 = pneg %p1272_p3 }
  0x91   : > { %p1278_p1 = pnand %p1277_p11, %p1273_p9 }
  0x93   : > { %1281 = shalt.err (!%p1278_p1)  }
  0x94   : > { %1012 = dma.hbm_to_vmem [thread:$0]  (%p1036_p8), %s300_s13, 16, %s302_s2, [#allocation3] }
  0x95   : > { %s308_s10 = scalar_select %p307_p5, %s306_s14, 0 }
  0x96   : > { %s327_s19 = sld [smem:[%s1016_s0 + %s2425_s24]]  ;;  %s1734_s26 = smov [#allocation2 + $0x5]  }
  0x97   : > { %s2427_s10 = smov (!%p878_p6, %s308_s10), 63  ;;  %s2023_s16 = sshll.u32 %s1734_s26, 4  ;;  %s344_s16 = int_to_ptr.vmem [resolvable:$true] %s2023_s16 }
  0x98   : > { %s311_s9 = scalar_lea.hbm %s2322_s1, %s2427_s10  ;;  %s347_s12 = sadd.s32 6, %s1900_s7 }
  0x99   : > { %s320_s11 = sshll.u32 %s311_s9, 4  ;;  %s321_s11 = int_to_ptr.hbm [resolvable:$true] %s320_s11 }
  0x9a   : > { %s1296_s21 = sshra.s32 %s321_s11, 4  ;;  %s1297_s21 = int_to_ptr.hbm [resolvable:$true] %s1296_s21 }
  0x9b   : > { %s1298_s2 = scalar_lea.hbm %s1297_s21, 1  ;;  %p1303_p6 = scmp.lt.s32.totalorder %s1297_s21, %s2322_s1 }
  0x9c   : > { %p1299_p12 = scmp.ne.s32.totalorder %s1297_s21, %s1298_s2  ;;  %p1304_p7 = scmp.lt.s32.totalorder %s1938_s17, %s1298_s2 }
  0x9e   : > { %p1300_p4 = pnand %p1299_p12, %p1036_p8  ;;  %p1305_p3 = por %p1304_p7, %p1303_p6 }
  0xa0   : > { %p1301_p5 = pneg %p1300_p4 }
  0xa2   : > { %p1306_p9 = pnand %p1305_p3, %p1301_p5 }
  0xa4   : > { %1309 = shalt.err (!%p1306_p9)  }
  0xa5   : > { %1015 = dma.hbm_to_vmem [thread:$0]  (%p1036_p8), %s321_s11, 16, %s323_s15, [#allocation3] }
  0xa6   : > { %p328_p10 = scmp.gt.s32.totalorder %s327_s19, 0  ;;  %p883_p0 = scmp.lt.s32.totalorder %s327_s19, 63 }
  0xa7   : > { %s1019_s0 = scalar_select %p1036_p8, [#allocation5], [#allocation50] }
  0xa8   : > { %s2429_s19 = smov (!%p328_p10, %s327_s19), 0  ;;  %s2431_s12 = smov (!%p1036_p8, %s347_s12), 0 }
  0xa9   : > { %s2433_s19 = smov (!%p883_p0, %s2429_s19), 63  ;;  %s348_s21 = sld [smem:[%s1019_s0 + %s2431_s12]] }
  0xaa   : > { %s332_s18 = scalar_lea.hbm %s2322_s1, %s2433_s19  ;;  %s368_s9 = sadd.s32 7, %s1900_s7 }
  0xab   : > { %s341_s8 = sshll.u32 %s332_s18, 4  ;;  %s389_s15 = sadd.s32 1, %s1710_s27  ;;  %s342_s8 = int_to_ptr.hbm [resolvable:$true] %s341_s8 }
  0xac   : > { %s1324_s11 = sshra.s32 %s342_s8, 4  ;;  %s1325_s11 = int_to_ptr.hbm [resolvable:$true] %s1324_s11 }
  0xad   : > { %s1326_s26 = scalar_lea.hbm %s1325_s11, 1  ;;  %p1331_p4 = scmp.lt.s32.totalorder %s1325_s11, %s2322_s1 }
  0xae   : > { %p1327_p11 = scmp.ne.s32.totalorder %s1325_s11, %s1326_s26  ;;  %p1332_p5 = scmp.lt.s32.totalorder %s1938_s17, %s1326_s26 }
  0xb0   : > { %p1328_p1 = pnand %p1327_p11, %p1036_p8  ;;  %p1333_p6 = por %p1332_p5, %p1331_p4 }
  0xb2   : > { %p1329_p12 = pneg %p1328_p1 }
  0xb4   : > { %p1334_p7 = pnand %p1333_p6, %p1329_p12 }
  0xb6   : > { %1337 = shalt.err (!%p1334_p7)  }
  0xb7   : > { %1018 = dma.hbm_to_vmem [thread:$0]  (%p1036_p8), %s342_s8, 16, %s344_s16, [#allocation3] }
  0xb8   : > { %s1022_s7 = scalar_select %p1036_p8, [#allocation5], [#allocation51] }
  0xb9   : > { %p349_p3 = scmp.gt.s32.totalorder %s348_s21, 0  ;;  %p888_p9 = scmp.lt.s32.totalorder %s348_s21, 63 }
  0xba   : > { %s2435_s9 = smov (!%p1036_p8, %s368_s9), 0  ;;  %s1735_s19 = smov [#allocation2 + $0x6]  }
  0xbb   : > { %s2437_s21 = smov (!%p349_p3, %s348_s21), 0  ;;  %s364_s12 = sshll.u32 %s1735_s19, 4  ;;  %s365_s12 = int_to_ptr.vmem [resolvable:$true] %s364_s12 }
  0xbc   : > { %s369_s24 = sld [smem:[%s1022_s7 + %s2435_s9]]  ;;  %s2439_s21 = smov (!%p888_p9, %s2437_s21), 63 }
  0xbd   : > { %s353_s10 = scalar_lea.hbm %s2322_s1, %s2439_s21 }
  0xbe   : > { %s362_s18 = sshll.u32 %s353_s10, 4  ;;  %s363_s18 = int_to_ptr.hbm [resolvable:$true] %s362_s18 }
  0xbf   : > { %s1352_s16 = sshra.s32 %s363_s18, 4  ;;  %s1353_s16 = int_to_ptr.hbm [resolvable:$true] %s1352_s16 }
  0xc0   : > { %s1354_s8 = scalar_lea.hbm %s1353_s16, 1  ;;  %p1359_p1 = scmp.lt.s32.totalorder %s1353_s16, %s2322_s1 }
  0xc1   : > { %p1355_p10 = scmp.ne.s32.totalorder %s1353_s16, %s1354_s8  ;;  %p1360_p12 = scmp.lt.s32.totalorder %s1938_s17, %s1354_s8 }
  0xc3   : > { %p1356_p0 = pnand %p1355_p10, %p1036_p8  ;;  %p1361_p4 = por %p1360_p12, %p1359_p1 }
  0xc5   : > { %p1357_p11 = pneg %p1356_p0 }
  0xc7   : > { %p1362_p5 = pnand %p1361_p4, %p1357_p11 }
  0xc9   : > { %1365 = shalt.err (!%p1362_p5)  }
  0xca   : > { %1021 = dma.hbm_to_vmem [thread:$0]  (%p1036_p8), %s363_s18, 16, %s365_s12, [#allocation3] }
  0xcb   : > { %p370_p6 = scmp.gt.s32.totalorder %s369_s24, 0  ;;  %p893_p7 = scmp.lt.s32.totalorder %s369_s24, 63 }
  0xcc   : > { %s1736_s21 = smov [#allocation2 + $0x7]  }
  0xcd   : > { %s2441_s24 = smov (!%p370_p6, %s369_s24), 0  ;;  %s385_s9 = sshll.u32 %s1736_s21, 4  ;;  %s386_s9 = int_to_ptr.vmem [resolvable:$true] %s385_s9 }
  0xce   : > { %s2443_s24 = smov (!%p893_p7, %s2441_s24), 63 }
  0xcf   : > { %s374_s7 = scalar_lea.hbm %s2322_s1, %s2443_s24 }
  0xd0   : > { %s383_s19 = sshll.u32 %s374_s7, 4  ;;  %s384_s19 = int_to_ptr.hbm [resolvable:$true] %s383_s19 }
  0xd1   : > { %s1380_s0 = sshra.s32 %s384_s19, 4  ;;  %s1381_s0 = int_to_ptr.hbm [resolvable:$true] %s1380_s0 }
  0xd2   : > { %s1382_s13 = scalar_lea.hbm %s1381_s0, 1  ;;  %p1387_p0 = scmp.lt.s32.totalorder %s1381_s0, %s2322_s1 }
  0xd3   : > { %p1383_p3 = scmp.ne.s32.totalorder %s1381_s0, %s1382_s13  ;;  %p1388_p11 = scmp.lt.s32.totalorder %s1938_s17, %s1382_s13 }
  0xd5   : > { %p1384_p9 = pnand %p1383_p3, %p1036_p8  ;;  %p1389_p1 = por %p1388_p11, %p1387_p0 }
  0xd7   : > { %p1385_p10 = pneg %p1384_p9 }
  0xd9   : > { %p1390_p12 = pnand %p1389_p1, %p1385_p10 }
  0xdb   : > { %1393 = shalt.err (!%p1390_p12)  }
  0xdc   : > { %1024 = dma.hbm_to_vmem [thread:$0]  (%p1036_p8), %s384_s19, 16, %s386_s9, [#allocation3] }
  0xdd   : > { %p898_p4 = scmp.ge.s32.totalorder %s389_s15, 4 }
  0xde   : > { %s2338_s18 = ssub.s32 (!%p898_p4), 1, %s2403_s25  ;;  %s980_s16 = sshll.u32 (!%p898_p4), %s1710_s27, 3 }
  0xdf   : > { %393 = sbr.rel (%p898_p4) target bundleno = 423 (0x1a7), region = 76  ;;  %s2083_s8 = sadd.s32 (!%p898_p4), 8, %s980_s16 }
  0xe0   : > { %s906_s11 = sshll.u32 (!%p898_p4), %s2338_s18, 3  ;;  %s396_s26 = sshra.s32 (!%p898_p4), %s2083_s8, 7 }
  0xe1   : > { %s401_s21 = sand.u32 (!%p898_p4), 127, %s2083_s8  ;;  %s398_s9 = sadd.s32 (!%p898_p4), %s1714_s28, %s396_s26 }
  0xe2   : > { %s900_s15 = sshll.u32 (!%p898_p4), %s398_s9, 7  ;;  %s2090_s7 = scalar_lea.vmem (!%p898_p4), [#allocation2], %s906_s11 }
  0xe3   : > { %s402_s2 = sadd.s32 (!%p898_p4), %s900_s15, %s401_s21  ;;  %s421_s19 = sshll.u32 (!%p898_p4), %s2090_s7, 4  ;;  %s2095_s19 = int_to_ptr.vmem [resolvable:$true] %s421_s19 }
  0xe4   : > { %s403_s14 = sld [smem:[#allocation5 + %s402_s2]]  ;;  %s425_s0 = sadd.s32 1, %s2083_s8 }
  0xe5   : > { %s773_s13 = scalar_lea.vmem %s2090_s7, 1 [#allocation2]  ;;  %s426_s12 = sshra.s32 %s425_s0, 7 }
  0xe6   : > { %s431_s10 = sand.u32 127, %s425_s0  ;;  %s428_s16 = sadd.s32 %s1714_s28, %s426_s12 }
  0xe7   : > { %s907_s24 = sshll.u32 %s428_s16, 7  ;;  %s2098_s18 = sshll.u32 %s773_s13, 4  ;;  %s451_s18 = int_to_ptr.vmem [resolvable:$true] %s2098_s18 }
  0xe8   : > { %s432_s26 = sadd.s32 %s907_s24, %s431_s10  ;;  %s454_s21 = sadd.s32 2, %s2083_s8 }
  0xe9   : > { %s2101_s11 = sld [smem:[#allocation5 + %s432_s26]]  ;;  %s455_s9 = sshra.s32 %s454_s21, 7 }
  0xea   : > { %p404_p8 = scmp.gt.s32.totalorder %s403_s14, 0  ;;  %p901_p5 = scmp.lt.s32.totalorder %s403_s14, 63 }
  0xeb   : > { %s457_s15 = sadd.s32 %s1714_s28, %s455_s9  ;;  %s2104_s2 = sand.u32 127, %s454_s21 }
  0xec   : > { %s2445_s14 = smov (!%p404_p8, %s403_s14), 0  ;;  %s2106_s0 = sshll.u32 %s457_s15, 7 }
  0xed   : > { %s2447_s14 = smov (!%p901_p5, %s2445_s14), 63  ;;  %s777_s24 = scalar_lea.vmem %s2090_s7, 2 [#allocation2] }
  0xee   : > { %s408_s10 = scalar_lea.hbm %s2322_s1, %s2447_s14  ;;  %s461_s16 = sadd.s32 %s2106_s0, %s2104_s2 }
  0xef   : > { %s419_s26 = sshll.u32 %s408_s10, 4  ;;  %p434_p6 = scmp.gt.s32.totalorder %s2101_s11, 0  ;;  %s420_s26 = int_to_ptr.hbm [resolvable:$true] %s419_s26 }
  0xf0   : > { %p908_p7 = scmp.lt.s32.totalorder %s2101_s11, 63  ;;  %s2372_s22 = ssub.s32 1, %s2403_s25 }
  0xf1   : > { %s2118_s9 = scalar_lea.sflag [#allocation3], %s2372_s22  ;;  %s1408_s21 = sshra.s32 %s420_s26, 4  ;;  %s1409_s21 = int_to_ptr.hbm [resolvable:$true] %s1408_s21 }
  0xf2   : > { %s1410_s6 = scalar_lea.hbm %s1409_s21, 1  ;;  %p1413_p9 = scmp.lt.s32.totalorder %s1409_s21, %s2322_s1 }
  0xf3   : > { %p1411_p3 = scmp.ne.s32.totalorder %s1409_s21, %s1410_s6  ;;  %p1414_p10 = scmp.lt.s32.totalorder %s1938_s17, %s1410_s6 }
  0xf5   : > { %p1415_p0 = por %p1414_p10, %p1413_p9 }
  0xf7   : > { %p1416_p11 = pnand %p1415_p0, %p1411_p3 }
  0xf9   : > { %1419 = shalt.err (!%p1416_p11)  }
  0xfa   : > { %s1420_s14 = sshra.s32 %s2095_s19, 4  ;;  %s1737_s0 = smov [#allocation2]   ;;  %s1421_s14 = int_to_ptr.vmem [resolvable:$true] %s1420_s14 }
  0xfb   : > { %s1422_s2 = scalar_lea.vmem %s1421_s14, 1  ;;  %s2125_s22 = scalar_lea.vmem %s1737_s0, 16 }
  0xfc   : > { %p1423_p1 = scmp.ne.s32.totalorder %s1421_s14, %s1422_s2  ;;  %p1426_p12 = scmp.lt.s32.totalorder %s2125_s22, %s1422_s2 }
  0xfe   : > { %p1428_p4 = pnand %p1426_p12, %p1423_p1 }
 0x100   : > { %1431 = shalt.err (!%p1428_p4)  }
 0x101   : > { %424 = dma.hbm_to_vmem [thread:$0]  %s420_s26, 16, %s2095_s19, %s2118_s9 }
 0x102   : > { %s435_s4 = scalar_select %p434_p6, %s2101_s11, 0 }
 0x103   : > { %s2134_s6 = sld [smem:[#allocation5 + %s461_s16]]  ;;  %s2140_s13 = sshll.u32 %s777_s24, 4  ;;  %s480_s13 = int_to_ptr.vmem [resolvable:$true] %s2140_s13 }
 0x104   : > { %s2449_s4 = smov (!%p908_p7, %s435_s4), 63  ;;  %s483_s12 = sadd.s32 3, %s2083_s8 }
 0x105   : > { %s438_s15 = scalar_lea.hbm %s2322_s1, %s2449_s4  ;;  %s484_s14 = sshra.s32 %s483_s12, 7 }
 0x106   : > { %s448_s2 = sshll.u32 %s438_s15, 4  ;;  %s486_s0 = sadd.s32 %s1714_s28, %s484_s14  ;;  %s449_s2 = int_to_ptr.hbm [resolvable:$true] %s448_s2 }
 0x107   : > { %s921_s19 = sshll.u32 %s486_s0, 7  ;;  %s1432_s26 = sshra.s32 %s449_s2, 4  ;;  %s1433_s26 = int_to_ptr.hbm [resolvable:$true] %s1432_s26 }
 0x108   : > { %s1434_s20 = scalar_lea.hbm %s1433_s26, 1  ;;  %p1437_p5 = scmp.lt.s32.totalorder %s1433_s26, %s2322_s1 }
 0x109   : > { %p1435_p8 = scmp.ne.s32.totalorder %s1433_s26, %s1434_s20  ;;  %p1438_p6 = scmp.lt.s32.totalorder %s1938_s17, %s1434_s20 }
 0x10b   : > { %p1439_p7 = por %p1438_p6, %p1437_p5 }
 0x10d   : > { %p1440_p3 = pnand %p1439_p7, %p1435_p8 }
 0x10f   : > { %1443 = shalt.err (!%p1440_p3)  }
 0x110   : > { %s1444_s24 = sshra.s32 %s451_s18, 4  ;;  %s1445_s24 = int_to_ptr.vmem [resolvable:$true] %s1444_s24 }
 0x111   : > { %s1446_s4 = scalar_lea.vmem %s1445_s24, 1 }
 0x112   : > { %p1447_p9 = scmp.ne.s32.totalorder %s1445_s24, %s1446_s4  ;;  %p1450_p10 = scmp.lt.s32.totalorder %s2125_s22, %s1446_s4 }
 0x114   : > { %p1452_p0 = pnand %p1450_p10, %p1447_p9 }
 0x116   : > { %1455 = shalt.err (!%p1452_p0)  }
 0x117   : > { %453 = dma.hbm_to_vmem [thread:$0]  %s449_s2, 16, %s451_s18, %s2118_s9 }
 0x118   : > { %p463_p11 = scmp.gt.s32.totalorder %s2134_s6, 0  ;;  %p915_p1 = scmp.lt.s32.totalorder %s2134_s6, 63 }
 0x119   : > { %s489_s20 = sand.u32 127, %s483_s12  ;;  %s781_s10 = scalar_lea.vmem %s2090_s7, 3 [#allocation2] }
 0x11a   : > { %s2451_s6 = smov (!%p463_p11, %s2134_s6), 0  ;;  %s490_s21 = sadd.s32 %s921_s19, %s489_s20 }
 0x11b   : > { %s2453_s6 = smov (!%p915_p1, %s2451_s6), 63  ;;  %s2158_s15 = sld [smem:[#allocation5 + %s490_s21]] }
 0x11c   : > { %s2160_s14 = sshll.u32 %s781_s10, 4  ;;  %s467_s16 = scalar_lea.hbm %s2322_s1, %s2453_s6  ;;  %s509_s14 = int_to_ptr.vmem [resolvable:$true] %s2160_s14 }
 0x11d   : > { %s512_s11 = sadd.s32 4, %s2083_s8  ;;  %s477_s18 = sshll.u32 %s467_s16, 4  ;;  %s478_s18 = int_to_ptr.hbm [resolvable:$true] %s477_s18 }
 0x11e   : > { %s513_s2 = sshra.s32 %s512_s11, 7  ;;  %s1456_s12 = sshra.s32 %s478_s18, 4  ;;  %s1457_s12 = int_to_ptr.hbm [resolvable:$true] %s1456_s12 }
 0x11f   : > { %s515_s24 = sadd.s32 %s1714_s28, %s513_s2  ;;  %s1458_s4 = scalar_lea.hbm %s1457_s12, 1 }
 0x120   : > { %p1459_p12 = scmp.ne.s32.totalorder %s1457_s12, %s1458_s4  ;;  %p1461_p4 = scmp.lt.s32.totalorder %s1457_s12, %s2322_s1 }
 0x121   : > { %p1462_p8 = scmp.lt.s32.totalorder %s1938_s17, %s1458_s4 }
 0x123   : > { %p1463_p5 = por %p1462_p8, %p1461_p4 }
 0x125   : > { %p1464_p6 = pnand %p1463_p5, %p1459_p12 }
 0x127   : > { %1467 = shalt.err (!%p1464_p6)  }
 0x128   : > { %s1468_s20 = sshra.s32 %s480_s13, 4  ;;  %s1469_s20 = int_to_ptr.vmem [resolvable:$true] %s1468_s20 }
 0x129   : > { %s1470_s6 = scalar_lea.vmem %s1469_s20, 1 }
 0x12a   : > { %p1471_p7 = scmp.ne.s32.totalorder %s1469_s20, %s1470_s6  ;;  %p1474_p3 = scmp.lt.s32.totalorder %s2125_s22, %s1470_s6 }
 0x12c   : > { %p1476_p9 = pnand %p1474_p3, %p1471_p7 }
 0x12e   : > { %1479 = shalt.err (!%p1476_p9)  }
 0x12f   : > { %482 = dma.hbm_to_vmem [thread:$0]  %s478_s18, 16, %s480_s13, %s2118_s9 }
 0x130   : > { %s928_s5 = sshll.u32 %s515_s24, 7  ;;  %s518_s10 = sand.u32 127, %s512_s11 }
 0x131   : > { %p492_p10 = scmp.gt.s32.totalorder %s2158_s15, 0  ;;  %p922_p0 = scmp.lt.s32.totalorder %s2158_s15, 63 }
 0x132   : > { %s519_s21 = sadd.s32 %s928_s5, %s518_s10  ;;  %s785_s0 = scalar_lea.vmem %s2090_s7, 4 [#allocation2] }
 0x133   : > { %s2455_s15 = smov (!%p492_p10, %s2158_s15), 0  ;;  %s2178_s26 = sld [smem:[#allocation5 + %s519_s21]] }
 0x134   : > { %s2457_s15 = smov (!%p922_p0, %s2455_s15), 63  ;;  %s2180_s16 = sshll.u32 %s785_s0, 4  ;;  %s538_s16 = int_to_ptr.vmem [resolvable:$true] %s2180_s16 }
 0x135   : > { %s541_s2 = sadd.s32 5, %s2083_s8  ;;  %s496_s13 = scalar_lea.hbm %s2322_s1, %s2457_s15 }
 0x136   : > { %s542_s18 = sshra.s32 %s541_s2, 7  ;;  %s506_s24 = sshll.u32 %s496_s13, 4  ;;  %s507_s24 = int_to_ptr.hbm [resolvable:$true] %s506_s24 }
 0x137   : > { %s544_s11 = sadd.s32 %s1714_s28, %s542_s18  ;;  %s1480_s20 = sshra.s32 %s507_s24, 4  ;;  %s1481_s20 = int_to_ptr.hbm [resolvable:$true] %s1480_s20 }
 0x138   : > { %s935_s19 = sshll.u32 %s544_s11, 7  ;;  %s1482_s6 = scalar_lea.hbm %s1481_s20, 1 }
 0x139   : > { %p1483_p11 = scmp.ne.s32.totalorder %s1481_s20, %s1482_s6  ;;  %p1485_p1 = scmp.lt.s32.totalorder %s1481_s20, %s2322_s1 }
 0x13a   : > { %p1486_p12 = scmp.lt.s32.totalorder %s1938_s17, %s1482_s6 }
 0x13c   : > { %p1487_p4 = por %p1486_p12, %p1485_p1 }
 0x13e   : > { %p1488_p8 = pnand %p1487_p4, %p1483_p11 }
 0x140   : > { %1491 = shalt.err (!%p1488_p8)  }
 0x141   : > { %s1492_s21 = sshra.s32 %s509_s14, 4  ;;  %s1493_s21 = int_to_ptr.vmem [resolvable:$true] %s1492_s21 }
 0x142   : > { %s1494_s15 = scalar_lea.vmem %s1493_s21, 1 }
 0x143   : > { %p1495_p5 = scmp.ne.s32.totalorder %s1493_s21, %s1494_s15  ;;  %p1498_p6 = scmp.lt.s32.totalorder %s2125_s22, %s1494_s15 }
 0x145   : > { %p1500_p7 = pnand %p1498_p6, %p1495_p5 }
 0x147   : > { %1503 = shalt.err (!%p1500_p7)  }
 0x148   : > { %511 = dma.hbm_to_vmem [thread:$0]  %s507_s24, 16, %s509_s14, %s2118_s9 }
 0x149   : > { %p521_p3 = scmp.gt.s32.totalorder %s2178_s26, 0  ;;  %p929_p9 = scmp.lt.s32.totalorder %s2178_s26, 63 }
 0x14a   : > { %s547_s0 = sand.u32 127, %s541_s2  ;;  %s789_s12 = scalar_lea.vmem %s2090_s7, 5 [#allocation2] }
 0x14b   : > { %s2459_s26 = smov (!%p521_p3, %s2178_s26), 0  ;;  %s548_s4 = sadd.s32 %s935_s19, %s547_s0 }
 0x14c   : > { %s2461_s26 = smov (!%p929_p9, %s2459_s26), 63  ;;  %s2198_s13 = sld [smem:[#allocation5 + %s548_s4]] }
 0x14d   : > { %s2200_s18 = sshll.u32 %s789_s12, 4  ;;  %s525_s6 = scalar_lea.hbm %s2322_s1, %s2461_s26  ;;  %s567_s18 = int_to_ptr.vmem [resolvable:$true] %s2200_s18 }
 0x14e   : > { %s570_s5 = sadd.s32 6, %s2083_s8  ;;  %s535_s14 = sshll.u32 %s525_s6, 4  ;;  %s536_s14 = int_to_ptr.hbm [resolvable:$true] %s535_s14 }
 0x14f   : > { %s571_s24 = sshra.s32 %s570_s5, 7  ;;  %s1504_s2 = sshra.s32 %s536_s14, 4  ;;  %s1505_s2 = int_to_ptr.hbm [resolvable:$true] %s1504_s2 }
 0x150   : > { %s573_s10 = sadd.s32 %s1714_s28, %s571_s24  ;;  %s1506_s21 = scalar_lea.hbm %s1505_s2, 1 }
 0x151   : > { %p1507_p10 = scmp.ne.s32.totalorder %s1505_s2, %s1506_s21  ;;  %p1509_p0 = scmp.lt.s32.totalorder %s1505_s2, %s2322_s1 }
 0x152   : > { %p1510_p11 = scmp.lt.s32.totalorder %s1938_s17, %s1506_s21 }
 0x154   : > { %p1511_p1 = por %p1510_p11, %p1509_p0 }
 0x156   : > { %p1512_p12 = pnand %p1511_p1, %p1507_p10 }
 0x158   : > { %1515 = shalt.err (!%p1512_p12)  }
 0x159   : > { %s1516_s0 = sshra.s32 %s538_s16, 4  ;;  %s1517_s0 = int_to_ptr.vmem [resolvable:$true] %s1516_s0 }
 0x15a   : > { %s1518_s26 = scalar_lea.vmem %s1517_s0, 1 }
 0x15b   : > { %p1519_p4 = scmp.ne.s32.totalorder %s1517_s0, %s1518_s26  ;;  %p1522_p8 = scmp.lt.s32.totalorder %s2125_s22, %s1518_s26 }
 0x15d   : > { %p1524_p5 = pnand %p1522_p8, %p1519_p4 }
 0x15f   : > { %1527 = shalt.err (!%p1524_p5)  }
 0x160   : > { %540 = dma.hbm_to_vmem [thread:$0]  %s536_s14, 16, %s538_s16, %s2118_s9 }
 0x161   : > { %s942_s12 = sshll.u32 %s573_s10, 7  ;;  %s576_s4 = sand.u32 127, %s570_s5 }
 0x162   : > { %p550_p6 = scmp.gt.s32.totalorder %s2198_s13, 0  ;;  %p936_p7 = scmp.lt.s32.totalorder %s2198_s13, 63 }
 0x163   : > { %s577_s11 = sadd.s32 %s942_s12, %s576_s4  ;;  %s793_s6 = scalar_lea.vmem %s2090_s7, 6 [#allocation2] }
 0x164   : > { %s2463_s13 = smov (!%p550_p6, %s2198_s13), 0  ;;  %s2217_s20 = sld [smem:[#allocation5 + %s577_s11]] }
 0x165   : > { %s2465_s13 = smov (!%p936_p7, %s2463_s13), 63  ;;  %s599_s24 = sadd.s32 7, %s2083_s8 }
 0x166   : > { %s554_s15 = scalar_lea.hbm %s2322_s1, %s2465_s13  ;;  %s600_s19 = sshra.s32 %s599_s24, 7 }
 0x167   : > { %s564_s0 = sshll.u32 %s554_s15, 4  ;;  %s602_s16 = sadd.s32 %s1714_s28, %s600_s19  ;;  %s565_s0 = int_to_ptr.hbm [resolvable:$true] %s564_s0 }
 0x168   : > { %s949_s5 = sshll.u32 %s602_s16, 7  ;;  %s1528_s14 = sshra.s32 %s565_s0, 4  ;;  %s1529_s14 = int_to_ptr.hbm [resolvable:$true] %s1528_s14 }
 0x169   : > { %s1530_s10 = scalar_lea.hbm %s1529_s14, 1  ;;  %p1533_p9 = scmp.lt.s32.totalorder %s1529_s14, %s2322_s1 }
 0x16a   : > { %p1531_p3 = scmp.ne.s32.totalorder %s1529_s14, %s1530_s10  ;;  %p1534_p10 = scmp.lt.s32.totalorder %s1938_s17, %s1530_s10 }
 0x16c   : > { %p1535_p0 = por %p1534_p10, %p1533_p9 }
 0x16e   : > { %p1536_p11 = pnand %p1535_p0, %p1531_p3 }
 0x170   : > { %1539 = shalt.err (!%p1536_p11)  }
 0x171   : > { %s1540_s8 = sshra.s32 %s567_s18, 4  ;;  %s1541_s8 = int_to_ptr.vmem [resolvable:$true] %s1540_s8 }
 0x172   : > { %s1542_s13 = scalar_lea.vmem %s1541_s8, 1 }
 0x173   : > { %p1543_p1 = scmp.ne.s32.totalorder %s1541_s8, %s1542_s13  ;;  %p1546_p12 = scmp.lt.s32.totalorder %s2125_s22, %s1542_s13 }
 0x175   : > { %p1548_p4 = pnand %p1546_p12, %p1543_p1 }
 0x177   : > { %1551 = shalt.err (!%p1548_p4)  }
 0x178   : > { %569 = dma.hbm_to_vmem [thread:$0]  %s565_s0, 16, %s567_s18, %s2118_s9 }
 0x179   : > { %p579_p8 = scmp.gt.s32.totalorder %s2217_s20, 0  ;;  %p943_p5 = scmp.lt.s32.totalorder %s2217_s20, 63 }
 0x17a   : > { %s605_s4 = sand.u32 127, %s599_s24  ;;  %s595_s11 = sshll.u32 %s793_s6, 4  ;;  %s596_s11 = int_to_ptr.vmem [resolvable:$true] %s595_s11 }
 0x17b   : > { %s2467_s20 = smov (!%p579_p8, %s2217_s20), 0  ;;  %s606_s2 = sadd.s32 %s949_s5, %s605_s4 }
 0x17c   : > { %s2469_s20 = smov (!%p943_p5, %s2467_s20), 63  ;;  %s607_s21 = sld [smem:[#allocation5 + %s606_s2]] }
 0x17d   : > { %s583_s16 = scalar_lea.hbm %s2322_s1, %s2469_s20 }
 0x17e   : > { %s593_s14 = sshll.u32 %s583_s16, 4  ;;  %s594_s14 = int_to_ptr.hbm [resolvable:$true] %s593_s14 }
 0x17f   : > { %s1552_s10 = sshra.s32 %s594_s14, 4  ;;  %s1553_s10 = int_to_ptr.hbm [resolvable:$true] %s1552_s10 }
 0x180   : > { %s1554_s26 = scalar_lea.hbm %s1553_s10, 1  ;;  %p1557_p7 = scmp.lt.s32.totalorder %s1553_s10, %s2322_s1 }
 0x181   : > { %p1555_p6 = scmp.ne.s32.totalorder %s1553_s10, %s1554_s26  ;;  %p1558_p3 = scmp.lt.s32.totalorder %s1938_s17, %s1554_s26 }
 0x183   : > { %p1559_p9 = por %p1558_p3, %p1557_p7 }
 0x185   : > { %p1560_p10 = pnand %p1559_p9, %p1555_p6 }
 0x187   : > { %1563 = shalt.err (!%p1560_p10)  }
 0x188   : > { %s1564_s6 = sshra.s32 %s596_s11, 4  ;;  %s1565_s6 = int_to_ptr.vmem [resolvable:$true] %s1564_s6 }
 0x189   : > { %s1566_s24 = scalar_lea.vmem %s1565_s6, 1 }
 0x18a   : > { %p1567_p0 = scmp.ne.s32.totalorder %s1565_s6, %s1566_s24  ;;  %p1570_p11 = scmp.lt.s32.totalorder %s2125_s22, %s1566_s24 }
 0x18c   : > { %p1572_p1 = pnand %p1570_p11, %p1567_p0 }
 0x18e   : > { %1575 = shalt.err (!%p1572_p1)  }
 0x18f   : > { %598 = dma.hbm_to_vmem [thread:$0]  %s594_s14, 16, %s596_s11, %s2118_s9 }
 0x190   : > { %s797_s20 = scalar_lea.vmem %s2090_s7, 7 [#allocation2]  ;;  %p608_p12 = scmp.gt.s32.totalorder %s607_s21, 0 }
 0x191   : > { %p950_p4 = scmp.lt.s32.totalorder %s607_s21, 63  ;;  %s624_s5 = sshll.u32 %s797_s20, 4  ;;  %s625_s5 = int_to_ptr.vmem [resolvable:$true] %s624_s5 }
 0x192   : > { %s2471_s21 = smov (!%p608_p12, %s607_s21), 0 }
 0x193   : > { %s2473_s21 = smov (!%p950_p4, %s2471_s21), 63 }
 0x194   : > { %s612_s13 = scalar_lea.hbm %s2322_s1, %s2473_s21 }
 0x195   : > { %s622_s4 = sshll.u32 %s612_s13, 4  ;;  %s623_s4 = int_to_ptr.hbm [resolvable:$true] %s622_s4 }
 0x196   : > { %s1576_s2 = sshra.s32 %s623_s4, 4  ;;  %s1577_s2 = int_to_ptr.hbm [resolvable:$true] %s1576_s2 }
 0x197   : > { %s1578_s15 = scalar_lea.hbm %s1577_s2, 1  ;;  %p1581_p5 = scmp.lt.s32.totalorder %s1577_s2, %s2322_s1 }
 0x198   : > { %p1579_p8 = scmp.ne.s32.totalorder %s1577_s2, %s1578_s15  ;;  %p1582_p6 = scmp.lt.s32.totalorder %s1938_s17, %s1578_s15 }
 0x19a   : > { %p1583_p7 = por %p1582_p6, %p1581_p5 }
 0x19c   : > { %p1584_p3 = pnand %p1583_p7, %p1579_p8 }
 0x19e   : > { %1587 = shalt.err (!%p1584_p3)  }
 0x19f   : > { %s1588_s7 = sshra.s32 %s625_s5, 4  ;;  %s1589_s7 = int_to_ptr.vmem [resolvable:$true] %s1588_s7 }
 0x1a0   : > { %s1590_s16 = scalar_lea.vmem %s1589_s7, 1 }
 0x1a1   : > { %p1591_p9 = scmp.ne.s32.totalorder %s1589_s7, %s1590_s16  ;;  %p1594_p10 = scmp.lt.s32.totalorder %s2125_s22, %s1590_s16 }
 0x1a3   : > { %p1596_p0 = pnand %p1594_p10, %p1591_p9 }
 0x1a5   : > { %1599 = shalt.err (!%p1596_p0)  }
 0x1a6   : > { %627 = dma.hbm_to_vmem [thread:$0]  %s623_s4, 16, %s625_s5, %s2118_s9 }
 0x1a7 PF: > { %s628_s21 = scalar_lea.sflag [#allocation3], %s2403_s25 }
 0x1a8   : > { %1678 = dma.done.wait %s628_s21, 128 }
 0x1a9   : > { %1679 = vsyncadd %s628_s21, 4294967168  ;;  %s956_s17 = sshll.u32 %s2403_s25, 3  ;;  %s2373_s10 = scalar_lea.vmem [#allocation6], %s1881_s29  ;;  %v1738_v3 = vmov 128.0   ;;  %v1136_v23 = vld [vmem:[%s2324_s3] ss:$0 sm:$0xff] }
 0x1aa   : > { %s647_s14 = scalar_lea.vmem [#allocation2], %s956_s17  ;;  %v649_v1 = vld [vmem:[%s2373_s10] sm:$0xff]  ;;  %1138 = vrcp.f32 %v1738_v3  ;;  %s958_s29 = sshll.u32 %s1714_s28, 2 }
 0x1ab   : > { %v648_v0 = vld [vmem:[%s647_s14] sm:$0xff]  ;;  %s700_s25 = sadd.s32 %s1710_s27, %s958_s29  ;;  %s2374_s6 = sld [smem:[#allocation73_spill]] }
 0x1ac   : > { %v650_v2 = vadd.f32 %v649_v1, %v648_v0  ;;  %s959_s9 = sshll.u32 %s700_s25, 3  ;;  %s2377_s12 = sld [smem:[#allocation72_spill]] }
 0x1ad   : > { %s2378_s8 = scalar_lea.vmem [#allocation9], %s1892_s30  ;;  %s2380_s15 = sand.u32 1, %s1690_s23  }
 0x1ae   : > { %651 = vadd.xlane.f32.xlu0 %v650_v2  ;;  %s704_s13 = sshll.u32 %s2378_s8, 4  ;;  %s2379_s2 = smov %s2378_s8  ;;  %s705_s13 = int_to_ptr.vmem [resolvable:$true] %s704_s13 }
 0x1af   : > { %s690_s19 = scalar_lea.sflag [#allocation8], %s2380_s15 }
 0x1b0   : > { %v1139_v4 = vpop.eup %1138 }
 0x1b1   : > { %v654_v5 = vmul.f32 128.0, %v1139_v4  ;;  %vm658_vm0 = vweird.f32 %v1139_v4  ;;  %s2375_s20 = smov %s2374_s6  ;;  %s702_s24 = scalar_lea.hbm %s2374_s6, %s959_s9 }
 0x1b2   : > { %v1137_v26 = vld [vmem:[%s2377_s12] ss:$0 sm:$0xff]  ;;  %s706_s4 = sshll.u32 %s702_s24, 4  ;;  %s1620_s17 = scalar_lea.hbm %s2375_s20, 64  ;;  %s707_s4 = int_to_ptr.hbm [resolvable:$true] %s706_s4 }
 0x1b3   : > { %v655_v6 = vsub.f32 1.0, %v654_v5  ;;  %s1614_s11 = sshra.s32 %s707_s4, 4  ;;  %s1615_s11 = int_to_ptr.hbm [resolvable:$true] %s1614_s11 }
 0x1b4   : > { %s1616_s7 = scalar_lea.hbm %s1615_s11, 8  ;;  %p1621_p4 = scmp.lt.s32.totalorder %s1615_s11, %s2375_s20 }
 0x1b5   : > { %v656_v7 = vmul.f32 %v1139_v4, %v655_v6  ;;  %p1617_p11 = scmp.ne.s32.totalorder %s1615_s11, %s1616_s7  ;;  %p1622_p8 = scmp.lt.s32.totalorder %s1620_s17, %s1616_s7 }
 0x1b7   : > { %v657_v8 = vadd.f32 %v1139_v4, %v656_v7  ;;  %p1618_p1 = pnand %p1617_p11, %p1862_p13  ;;  %p1623_p5 = por %p1622_p8, %p1621_p4 }
 0x1b9   : > { %v659_v9 = vsel %vm658_vm0, %v1139_v4, %v657_v8  ;;  %p1619_p12 = pneg %p1618_p1 }
 0x1bb   : > { %p1624_p6 = pnand %p1623_p5, %p1619_p12 }
 0x221   : > { %v652_v10 = vpop.xlane.xlu0 %651 }
 0x222   : > { %v660_v11 = vmul.f32 %v659_v9, %v652_v10 }
 0x224   : > { %v661_v12 = vsub.f32 %v650_v2, %v660_v11 }
 0x226   : > { %v662_v13 = vmul.f32 %v661_v12, %v661_v12 }
 0x228   : > { %663 = vadd.xlane.f32.xlu0 %v662_v13 }
 0x29b   : > { %v664_v14 = vpop.xlane.xlu0 %663 }
 0x29c   : > { %v665_v15 = vmul.f32 %v664_v14, %v659_v9 }
 0x29e   : > { %v666_v16 = vadd.f32 1e-05, %v665_v15 }
 0x2a0   : > { %1140 = vrsqrt.f32 %v666_v16  ;;  %vm673_vm2 = vweird.f32 %v666_v16 }
 0x2a6   : > { %v1141_v17 = vpop.eup %1140 }
 0x2a7   : > { %v668_v18 = vmul.f32 %v1141_v17, %v666_v16  ;;  %vm674_vm1 = vweird.f32 %v1141_v17 }
 0x2a8   : > { %vm675_vm3 = vmor %vm673_vm2, %vm674_vm1 }
 0x2a9   : > { %v669_v19 = vmul.f32 %v1141_v17, %v668_v18 }
 0x2ab   : > { %v670_v20 = vmul.f32 0.5, %v669_v19 }
 0x2ad   : > { %v671_v21 = vsub.f32 1.5, %v670_v20 }
 0x2af   : > { %v672_v22 = vmul.f32 %v1141_v17, %v671_v21 }
 0x2b1   : > { %v676_v24 = vsel %vm675_vm3, %v1141_v17, %v672_v22 }
 0x2b2   : > { %v677_v25 = vmul.f32 %v676_v24, %v661_v12 }
 0x2b4   : > { %v683_v27 = vmul.f32 %v1136_v23, %v677_v25 }
 0x2b6   : > { %v687_v28 = vadd.f32 %v1137_v26, %v683_v27 }
 0x2b8   : > { %688 = vst [vmem:[%s2379_s2] sm:$0xff] %v687_v28 }
 0x2b9   : > { %1627 = shalt.err (!%p1624_p6)
}
 0x2ba   : > { %1025 = dma.vmem_to_hbm [thread:$0]  (%p1862_p13), %s705_s13, 128, %s707_s4, %s690_s19  }
 0x2bb PF: > { %s2381_s30 = sld [smem:[#allocation62_spill]] }
 0x2bc   : > { %s2382_s29 = sld [smem:[#allocation56_spill]] }
 0x2c1   : > { %p1037_p7 = scmp.ge.s32.totalorder %s2381_s30, 2 }
 0x2c2   : > { %s718_s9 = sand.u32 1, %s2382_s29  }
 0x2c3   : > { %p1032_p3 = pnand %p1037_p7, %p1867_p2  ;;  %s719_s22 = scalar_lea.sflag [#allocation8], %s718_s9 }
 0x2c5   : > { %p1033_p9 = pneg %p1032_p3 }
 0x2c7   : > { %1681 = dma.done.wait (%p1033_p9), %s719_s22, 128  }
 0x2c8   : > { %1683 = vsyncadd (%p1033_p9), %s719_s22, 4294967168  ;;  %s29_s6 = sadd.s32 1, %s2381_s30   ;;  %s2384_s26 = sld [smem:[#allocation57_spill]] }
 0x2c9   : > { %p26_p10 = scmp.ge.s32.totalorder %s29_s6, 10   ;;  %s2385_s24 = sld [smem:[#allocation66_spill]] }
 0x2ca   : > { %s2386_s25 = sld [smem:[#allocation58_spill]]  ;;  %s2393_s22 = smov %s1690_s23 }
 0x2cb   : > { %s2387_s18 = sld [smem:[#allocation59_spill]] }
 0x2cc   : > { %s2388_s0 = sld [smem:[#allocation65_spill]] }
 0x2cd   : > { %s2389_s27 = sld [smem:[#allocation60_spill]]  ;;  %28 = sbr.rel (!%p26_p10) target bundleno = 17 (0x11), region = 184 }
 0x2ce   : > { %s2390_s28 = sld [smem:[#allocation61_spill]]  ;;  %s2394_s23 = smov %s2384_s26 }
 0x2cf   : > { %s2391_s29 = sld [smem:[#allocation63_spill]] }
 0x2d0   : > { %s2392_s30 = sld [smem:[#allocation64_spill]] }
 0x2d1   : > { %s2395_s26 = smov %s2387_s18 }
 0x2d2   :  { %725 = vsyncpa [#allocation7], 1 }
 0x2d3   :  { %727 = vsyncpa [#allocation7 + $0x1], 1 }
 0x2d4   :  { %728 = vsyncpa [#allocation8], 1 }
 0x2d5   :  { %730 = vsyncpa [#allocation8 + $0x1], 1 }
 0x2d6   :  { %731 = vsyncmov [#allocation3] }
 0x2d9   :  { %s732_s5 = vpop.sfrf %731 }
 0x2da   :  { %p962_p13 = scmp.ne.s32.totalorder %s732_s5, 0 }
 0x2dc   :  { %736 = shalt.err (%p962_p13)  }
 0x2dd   :  { %738 = vsyncmov [#allocation3 + $0x1] }
 0x2e0   :  { %s739_s12 = vpop.sfrf %738 }
 0x2e1   :  { %p963_p2 = scmp.ne.s32.totalorder %s739_s12, 0 }
 0x2e3   :  { %743 = shalt.err (%p963_p2)  }

</bundles_post_ra>
